<compile_context>
chip_gen: v6e
topology: v6e:2x2x1
jax: 0.10.0
libtpu: 0.0.40
codegen_flags: <defaults>
</compile_context>

<pallas_src>
import jax
import jax.numpy as jnp
from jax.experimental import pallas as pl
from jax.experimental.pallas import tpu as pltpu

DIMS = (32, 32, 32, 32)   # hidden dims (module default is [256]*4; small for the demo)
N_BR = 4                  # four bilinear neighbours / MLP branches
OUT_PAD = 128             # RGB (3) zero-padded to 128 matmul lanes (transposed on store)


def _mlp4_kernel(x_ref, cw_ref, expand_ref,
                 w1_ref, b1_ref, w2_ref, b2_ref, w3_ref, b3_ref,
                 w4_ref, b4_ref, w5_ref, b5_ref, out_ref):
    """All 4 MLP branches packed block-diagonally over lanes + fused combine.

    x_ref:   (tm, 4*C)  f32    lanes [br*C:(br+1)*C] = neighbour br's features
    cw_ref:  (tm, 4)    f32    per-row combine weight of each branch
    expand:  (4, 4*H)   bf16   0/1 mask: row br is 1 over lanes [br*H:(br+1)*H]
    w1:      (4*C, 4*H) bf16   block-diagonal        b1..b4: (1, 4*H) f32
    w2..w4:  (4*H, 4*H) bf16   block-diagonal
    w5:      (4*H, 128) bf16   row-stacked, cols 0:3 = per-branch RGB weights
    b5:      (4, 128)   bf16   row br, cols 0:3 = branch br RGB bias
    out:     (8, tm)    f32    rows 0:3 = image (transposed), rest 0
    """
    f32 = jnp.float32
    bf16 = jnp.bfloat16

    # In-kernel f32->bf16 cast (saves a full wrapper read+write pass over x).
    x = x_ref[...].astype(bf16)
    h = jnp.dot(x, w1_ref[...], preferred_element_type=f32) + b1_ref[...]
    h = jnp.maximum(h, 0.0)
    for w_ref, b_ref in ((w2_ref, b2_ref), (w3_ref, b3_ref), (w4_ref, b4_ref)):
        h = jnp.dot(h.astype(bf16), w_ref[...], preferred_element_type=f32) + b_ref[...]
        h = jnp.maximum(h, 0.0)                          # ReLU in f32 (VPU)

    # Expand cw (tm, 4) -> (tm, 4*H) via the precomputed mask (tiny MXU dot).
    cw = cw_ref[...].astype(bf16)                        # (tm, 4)
    cw_wide = jnp.dot(cw, expand_ref[...], preferred_element_type=f32)

    # image = sum_br cw_br * (h_br @ w5_br + b5_br), done as one stacked matmul.
    weighted = (h * cw_wide).astype(bf16)
    out = jnp.dot(weighted, w5_ref[...], preferred_element_type=f32)
    out = out + jnp.dot(cw, b5_ref[...], preferred_element_type=f32)   # (tm, 128)

    # Pack the writeback: XLU-transpose (tm,128) -> (128,tm) and store only an
    # 8-sublane, tm-lane-dense slab (rows 0:2 carry RGB): 32 B/row, not 512.
    out_ref[...] = out.T[:8, :]


def _block_diag(blocks):
    rows = sum(b.shape[0] for b in blocks)
    cols = sum(b.shape[1] for b in blocks)
    out = jnp.zeros((rows, cols), blocks[0].dtype)
    r = c = 0
    for b in blocks:
        out = out.at[r:r + b.shape[0], c:c + b.shape[1]].set(b)
        r += b.shape[0]
        c += b.shape[1]
    return out


def pack_params(params):
    """Per-branch [w(4,in,out), b(4,1,out)] pairs -> packed bf16/f32 kernel tensors."""
    n_layers = len(params) // 2
    packed = []
    for li in range(n_layers - 1):                       # hidden layers: block-diag
        w, b = params[2 * li], params[2 * li + 1]
        packed.append(_block_diag([w[br] for br in range(N_BR)]).astype(jnp.bfloat16))
        packed.append(jnp.concatenate([b[br] for br in range(N_BR)], axis=-1)
                      .astype(jnp.float32))
    w5, b5 = params[-2], params[-1]                      # (4, H, 3), (4, 1, 3)
    hdim = w5.shape[1]
    w5p = jnp.zeros((N_BR * hdim, OUT_PAD), jnp.float32)
    b5p = jnp.zeros((N_BR, OUT_PAD), jnp.float32)
    for br in range(N_BR):
        w5p = w5p.at[br * hdim:(br + 1) * hdim, 0:3].set(w5[br])
        b5p = b5p.at[br, 0:3].set(b5[br, 0])
    packed.append(w5p.astype(jnp.bfloat16))
    packed.append(b5p.astype(jnp.bfloat16))
    return packed, hdim


def _make_expand(hdim):
    """(4, 4*hdim) 0/1 mask: row br is 1 over lanes [br*hdim:(br+1)*hdim]."""
    width = N_BR * hdim
    lane = jnp.arange(width)[None, :] // hdim
    row = jnp.arange(N_BR)[:, None]
    return (lane == row).astype(jnp.bfloat16)


def mlp_forward(x, areas, params, *, tm=1024):
    """x: (B, Q, 4, C) f32, areas: (B, Q, 4) f32 -> image (B, Q, 3) f32."""
    B, Q, nbr, C = x.shape
    assert nbr == N_BR
    M = B * Q

    # use_le preprocessing (cheap cross-row reductions) in plain JAX: normalized
    # areas -> per-branch combine weights, matching the torch code exactly
    # (including the .sum(0) over batch for branches 1-3).
    a = areas.astype(jnp.float32) + 1e-9
    an = a / a.sum(axis=2, keepdims=True)                               # (B, Q, 4)
    cw = jnp.stack([
        an[:, :, 3],
        jnp.broadcast_to(an[:, :, 2].sum(0)[None, :], (B, Q)),
        jnp.broadcast_to(an[:, :, 1].sum(0)[None, :], (B, Q)),
        jnp.broadcast_to(an[:, :, 0].sum(0)[None, :], (B, Q)),
    ], axis=-1).reshape(M, N_BR)                                        # (M, 4)

    # Row-major flatten (free; no transpose / copy pass). bf16 cast happens in-kernel.
    x_flat = x.reshape(M, nbr * C)                                      # (M, 4*C) f32

    # Tile rows: multiple of 128 (lane-dense transposed output), big enough to
    # amortize the ~0.35us per-step overhead, but capped so the grid has >=2
    # steps whenever possible (megacore sharding on v7x).
    tm = max(128, (tm // 128) * 128)
    two_step_cap = ((pl.cdiv(M, 2) + 127) // 128) * 128
    tm = min(tm, max(128, two_step_cap))
    grid = (pl.cdiv(M, tm),)                                            # ragged tail OK

    packed, hdim = pack_params(params)
    consts = [_make_expand(hdim)] + packed
    const_specs = [pl.BlockSpec(c.shape, lambda i: (0, 0)) for c in consts]

    out_t = pl.pallas_call(
        _mlp4_kernel,
        out_shape=jax.ShapeDtypeStruct((8, M), jnp.float32),
        grid=grid,
        in_specs=[pl.BlockSpec((tm, nbr * C), lambda i: (i, 0)),
                  pl.BlockSpec((tm, N_BR), lambda i: (i, 0))] + const_specs,
        out_specs=pl.BlockSpec((8, tm), lambda i: (0, i)),
        compiler_params=pltpu.CompilerParams(dimension_semantics=("parallel",)),
    )(x_flat, cw, *consts)

    # Tiny (3, M) slice + transpose in the wrapper (vs a 128*M slice before).
    return out_t[:3, :].T.reshape(B, Q, 3)


def init_params(key, c_in, dims=DIMS):
    """Deterministic init mimicking nn.Linear (uniform +-1/sqrt(fan_in)).

    Returns [w1, b1, ..., w5, b5] with each w stacked over the 4 branches:
    w: (4, in, out), b: (4, 1, out). (Torch stores (out, in); we store transposed.)
    """
    sizes = [c_in] + list(dims) + [3]
    params = []
    for li in range(len(sizes) - 1):
        fan_in, fan_out = sizes[li], sizes[li + 1]
        bound = 1.0 / (fan_in ** 0.5)
        ws, bs = [], []
        for _ in range(4):
            key, k1, k2 = jax.random.split(key, 3)
            ws.append(jax.random.uniform(k1, (fan_in, fan_out), jnp.float32, -bound, bound))
            bs.append(jax.random.uniform(k2, (1, fan_out), jnp.float32, -bound, bound))
        params += [jnp.stack(ws), jnp.stack(bs)]
    return params


def ref_forward(x, areas, params):
    """Pure-JAX f32 reference reproducing the torch forward (use_le=True)."""
    B, Q, _, C = x.shape
    outs = []
    for br in range(4):
        h = x[:, :, br, :].reshape(-1, C)
        for li in range(0, len(params), 2):
            h = h @ params[li][br] + params[li + 1][br]
            if li < len(params) - 2:
                h = jnp.maximum(h, 0.0)
        outs.append(h.reshape(B, Q, 3))
    a = areas + 1e-9
    an = a / a.sum(axis=2, keepdims=True)
    image = (outs[0] * an[:, :, 3:4]
             + outs[1] * an[:, :, 2].sum(0)[None, :, None]
             + outs[2] * an[:, :, 1].sum(0)[None, :, None]
             + outs[3] * an[:, :, 0].sum(0)[None, :, None])
    return image


if __name__ == "__main__":
    B, Q, FEATURES = 2, 250, 6
    use_fu, use_le, use_cd = False, True, False          # ablation = [fu, le, cd]
    c_in = FEATURES * (9 if use_fu else 1) + (2 if use_le else 0) + (2 if use_cd else 0)

    key = jax.random.PRNGKey(0)
    kx, ka, kp = jax.random.split(key, 3)
    x = jax.random.normal(kx, (B, Q, 4, c_in), dtype=jnp.float32)
    areas = jax.random.uniform(ka, (B, Q, 4), dtype=jnp.float32, minval=0.1, maxval=1.0)
    params = init_params(kp, c_in)

    # M = 500 -> tm auto-caps to 256 -> 2 grid steps (ragged last tile, no pad).
    out = mlp_forward(x, areas, params)
    out = jax.block_until_ready(out)

    ref = ref_forward(x, areas, params)
    assert out.shape == (B, Q, 3)
    err = jnp.max(jnp.abs(out - ref))
    assert jnp.allclose(out, ref, atol=3e-2, rtol=3e-2), f"max err {err}"
    print("KERNEL_OK")
</pallas_src>

<mosaic_0001>
module attributes {stable_mosaic.version = 11 : i64} {
  func.func @_mlp4_kernel(%arg0: i32, %arg1: memref<256x32xf32, #tpu.memory_space<vmem>>, %arg2: memref<256x4xf32, #tpu.memory_space<vmem>>, %arg3: memref<4x128xbf16, #tpu.memory_space<vmem>>, %arg4: memref<32x128xbf16, #tpu.memory_space<vmem>>, %arg5: memref<1x128xf32, #tpu.memory_space<vmem>>, %arg6: memref<128x128xbf16, #tpu.memory_space<vmem>>, %arg7: memref<1x128xf32, #tpu.memory_space<vmem>>, %arg8: memref<128x128xbf16, #tpu.memory_space<vmem>>, %arg9: memref<1x128xf32, #tpu.memory_space<vmem>>, %arg10: memref<128x128xbf16, #tpu.memory_space<vmem>>, %arg11: memref<1x128xf32, #tpu.memory_space<vmem>>, %arg12: memref<128x128xbf16, #tpu.memory_space<vmem>>, %arg13: memref<4x128xbf16, #tpu.memory_space<vmem>>, %arg14: memref<8x256xf32, #tpu.memory_space<vmem>>) attributes {dimension_semantics = [#tpu.dimension_semantics<parallel>], iteration_bounds = array<i64: 2>, scalar_prefetch = 0 : i64, scratch_operands = 0 : i64, tpu.core_type = #tpu.core_type<tc>, window_params = [{transform_indices = @transform_0, window_bounds = array<i64: 256, 32>}, {transform_indices = @transform_1, window_bounds = array<i64: 256, 4>}, {pipeline_mode = #tpu.pipeline_mode<synchronous>, transform_indices = @transform_2, window_bounds = array<i64: 4, 128>}, {pipeline_mode = #tpu.pipeline_mode<synchronous>, transform_indices = @transform_3, window_bounds = array<i64: 32, 128>}, {pipeline_mode = #tpu.pipeline_mode<synchronous>, transform_indices = @transform_4, window_bounds = array<i64: 1, 128>}, {pipeline_mode = #tpu.pipeline_mode<synchronous>, transform_indices = @transform_5, window_bounds = array<i64: 128, 128>}, {pipeline_mode = #tpu.pipeline_mode<synchronous>, transform_indices = @transform_6, window_bounds = array<i64: 1, 128>}, {pipeline_mode = #tpu.pipeline_mode<synchronous>, transform_indices = @transform_7, window_bounds = array<i64: 128, 128>}, {pipeline_mode = #tpu.pipeline_mode<synchronous>, transform_indices = @transform_8, window_bounds = array<i64: 1, 128>}, {pipeline_mode = #tpu.pipeline_mode<synchronous>, transform_indices = @transform_9, window_bounds = array<i64: 128, 128>}, {pipeline_mode = #tpu.pipeline_mode<synchronous>, transform_indices = @transform_10, window_bounds = array<i64: 1, 128>}, {pipeline_mode = #tpu.pipeline_mode<synchronous>, transform_indices = @transform_11, window_bounds = array<i64: 128, 128>}, {pipeline_mode = #tpu.pipeline_mode<synchronous>, transform_indices = @transform_12, window_bounds = array<i64: 4, 128>}, {transform_indices = @transform_13, window_bounds = array<i64: 8, 256>}]} {
    %c0 = arith.constant 0 : index
    %c0_0 = arith.constant 0 : index
    %0 = vector.load %arg1[%c0, %c0_0] : memref<256x32xf32, #tpu.memory_space<vmem>>, vector<256x32xf32>
    %1 = arith.truncf %0 : vector<256x32xf32> to vector<256x32xbf16>
    %c0_1 = arith.constant 0 : index
    %c0_2 = arith.constant 0 : index
    %2 = vector.load %arg4[%c0_1, %c0_2] : memref<32x128xbf16, #tpu.memory_space<vmem>>, vector<32x128xbf16>
    %cst = arith.constant dense<0.000000e+00> : vector<256x128xf32>
    %3 = tpu.matmul %1, %2, %cst {dimension_numbers = #tpu.dot_dimension_numbers<[1], [0], [0], [1], [0, 0, 1, 1], [], []>} : vector<256x32xbf16>, vector<32x128xbf16>, vector<256x128xf32> -> vector<256x128xf32>
    %c0_3 = arith.constant 0 : index
    %c0_4 = arith.constant 0 : index
    %4 = vector.load %arg5[%c0_3, %c0_4] : memref<1x128xf32, #tpu.memory_space<vmem>>, vector<1x128xf32>
    %5 = vector.broadcast %4 : vector<1x128xf32> to vector<256x128xf32>
    %6 = arith.addf %3, %5 : vector<256x128xf32>
    %cst_5 = arith.constant 0.000000e+00 : f32
    %7 = vector.broadcast %cst_5 : f32 to vector<256x128xf32>
    %8 = arith.maximumf %6, %7 : vector<256x128xf32>
    %9 = arith.truncf %8 : vector<256x128xf32> to vector<256x128xbf16>
    %c0_6 = arith.constant 0 : index
    %c0_7 = arith.constant 0 : index
    %10 = vector.load %arg6[%c0_6, %c0_7] : memref<128x128xbf16, #tpu.memory_space<vmem>>, vector<128x128xbf16>
    %cst_8 = arith.constant dense<0.000000e+00> : vector<256x128xf32>
    %11 = tpu.matmul %9, %10, %cst_8 {dimension_numbers = #tpu.dot_dimension_numbers<[1], [0], [0], [1], [0, 0, 1, 1], [], []>} : vector<256x128xbf16>, vector<128x128xbf16>, vector<256x128xf32> -> vector<256x128xf32>
    %c0_9 = arith.constant 0 : index
    %c0_10 = arith.constant 0 : index
    %12 = vector.load %arg7[%c0_9, %c0_10] : memref<1x128xf32, #tpu.memory_space<vmem>>, vector<1x128xf32>
    %13 = vector.broadcast %12 : vector<1x128xf32> to vector<256x128xf32>
    %14 = arith.addf %11, %13 : vector<256x128xf32>
    %cst_11 = arith.constant 0.000000e+00 : f32
    %15 = vector.broadcast %cst_11 : f32 to vector<256x128xf32>
    %16 = arith.maximumf %14, %15 : vector<256x128xf32>
    %17 = arith.truncf %16 : vector<256x128xf32> to vector<256x128xbf16>
    %c0_12 = arith.constant 0 : index
    %c0_13 = arith.constant 0 : index
    %18 = vector.load %arg8[%c0_12, %c0_13] : memref<128x128xbf16, #tpu.memory_space<vmem>>, vector<128x128xbf16>
    %cst_14 = arith.constant dense<0.000000e+00> : vector<256x128xf32>
    %19 = tpu.matmul %17, %18, %cst_14 {dimension_numbers = #tpu.dot_dimension_numbers<[1], [0], [0], [1], [0, 0, 1, 1], [], []>} : vector<256x128xbf16>, vector<128x128xbf16>, vector<256x128xf32> -> vector<256x128xf32>
    %c0_15 = arith.constant 0 : index
    %c0_16 = arith.constant 0 : index
    %20 = vector.load %arg9[%c0_15, %c0_16] : memref<1x128xf32, #tpu.memory_space<vmem>>, vector<1x128xf32>
    %21 = vector.broadcast %20 : vector<1x128xf32> to vector<256x128xf32>
    %22 = arith.addf %19, %21 : vector<256x128xf32>
    %cst_17 = arith.constant 0.000000e+00 : f32
    %23 = vector.broadcast %cst_17 : f32 to vector<256x128xf32>
    %24 = arith.maximumf %22, %23 : vector<256x128xf32>
    %25 = arith.truncf %24 : vector<256x128xf32> to vector<256x128xbf16>
    %c0_18 = arith.constant 0 : index
    %c0_19 = arith.constant 0 : index
    %26 = vector.load %arg10[%c0_18, %c0_19] : memref<128x128xbf16, #tpu.memory_space<vmem>>, vector<128x128xbf16>
    %cst_20 = arith.constant dense<0.000000e+00> : vector<256x128xf32>
    %27 = tpu.matmul %25, %26, %cst_20 {dimension_numbers = #tpu.dot_dimension_numbers<[1], [0], [0], [1], [0, 0, 1, 1], [], []>} : vector<256x128xbf16>, vector<128x128xbf16>, vector<256x128xf32> -> vector<256x128xf32>
    %c0_21 = arith.constant 0 : index
    %c0_22 = arith.constant 0 : index
    %28 = vector.load %arg11[%c0_21, %c0_22] : memref<1x128xf32, #tpu.memory_space<vmem>>, vector<1x128xf32>
    %29 = vector.broadcast %28 : vector<1x128xf32> to vector<256x128xf32>
    %30 = arith.addf %27, %29 : vector<256x128xf32>
    %cst_23 = arith.constant 0.000000e+00 : f32
    %31 = vector.broadcast %cst_23 : f32 to vector<256x128xf32>
    %32 = arith.maximumf %30, %31 : vector<256x128xf32>
    %c0_24 = arith.constant 0 : index
    %c0_25 = arith.constant 0 : index
    %33 = vector.load %arg2[%c0_24, %c0_25] : memref<256x4xf32, #tpu.memory_space<vmem>>, vector<256x4xf32>
    %34 = arith.truncf %33 : vector<256x4xf32> to vector<256x4xbf16>
    %c0_26 = arith.constant 0 : index
    %c0_27 = arith.constant 0 : index
    %35 = vector.load %arg3[%c0_26, %c0_27] : memref<4x128xbf16, #tpu.memory_space<vmem>>, vector<4x128xbf16>
    %cst_28 = arith.constant dense<0.000000e+00> : vector<256x128xf32>
    %36 = tpu.matmul %34, %35, %cst_28 {dimension_numbers = #tpu.dot_dimension_numbers<[1], [0], [0], [1], [0, 0, 1, 1], [], []>} : vector<256x4xbf16>, vector<4x128xbf16>, vector<256x128xf32> -> vector<256x128xf32>
    %37 = arith.mulf %32, %36 : vector<256x128xf32>
    %38 = arith.truncf %37 : vector<256x128xf32> to vector<256x128xbf16>
    %c0_29 = arith.constant 0 : index
    %c0_30 = arith.constant 0 : index
    %39 = vector.load %arg12[%c0_29, %c0_30] : memref<128x128xbf16, #tpu.memory_space<vmem>>, vector<128x128xbf16>
    %cst_31 = arith.constant dense<0.000000e+00> : vector<256x128xf32>
    %40 = tpu.matmul %38, %39, %cst_31 {dimension_numbers = #tpu.dot_dimension_numbers<[1], [0], [0], [1], [0, 0, 1, 1], [], []>} : vector<256x128xbf16>, vector<128x128xbf16>, vector<256x128xf32> -> vector<256x128xf32>
    %c0_32 = arith.constant 0 : index
    %c0_33 = arith.constant 0 : index
    %41 = vector.load %arg13[%c0_32, %c0_33] : memref<4x128xbf16, #tpu.memory_space<vmem>>, vector<4x128xbf16>
    %cst_34 = arith.constant dense<0.000000e+00> : vector<256x128xf32>
    %42 = tpu.matmul %34, %41, %cst_34 {dimension_numbers = #tpu.dot_dimension_numbers<[1], [0], [0], [1], [0, 0, 1, 1], [], []>} : vector<256x4xbf16>, vector<4x128xbf16>, vector<256x128xf32> -> vector<256x128xf32>
    %43 = arith.addf %40, %42 : vector<256x128xf32>
    %44 = tpu.transpose %43, [1, 0] : vector<256x128xf32> -> vector<128x256xf32>
    %45 = vector.extract_strided_slice %44 {offsets = [0, 0], sizes = [8, 256], strides = [1, 1]} : vector<128x256xf32> to vector<8x256xf32>
    %c0_35 = arith.constant 0 : index
    %c0_36 = arith.constant 0 : index
    %46 = vector.load %arg14[%c0_35, %c0_36] : memref<8x256xf32, #tpu.memory_space<vmem>>, vector<8x256xf32>
    tpu.vector_store %arg14[%c0_35, %c0_36], %45 {strides = array<i32>} : memref<8x256xf32, #tpu.memory_space<vmem>>, vector<8x256xf32>,
    return
  }
  func.func @transform_0(%arg0: i32) -> (i32, i32) {
    %c0_i32 = arith.constant 0 : i32
    %c0_i32_0 = arith.constant 0 : i32
    return %arg0, %c0_i32 : i32, i32
  }
  func.func @transform_1(%arg0: i32) -> (i32, i32) {
    %c0_i32 = arith.constant 0 : i32
    %c0_i32_0 = arith.constant 0 : i32
    return %arg0, %c0_i32 : i32, i32
  }
  func.func @transform_2(%arg0: i32) -> (i32, i32) {
    %c0_i32 = arith.constant 0 : i32
    %c0_i32_0 = arith.constant 0 : i32
    %c0_i32_1 = arith.constant 0 : i32
    return %c0_i32, %c0_i32_0 : i32, i32
  }
  func.func @transform_3(%arg0: i32) -> (i32, i32) {
    %c0_i32 = arith.constant 0 : i32
    %c0_i32_0 = arith.constant 0 : i32
    %c0_i32_1 = arith.constant 0 : i32
    return %c0_i32, %c0_i32_0 : i32, i32
  }
  func.func @transform_4(%arg0: i32) -> (i32, i32) {
    %c0_i32 = arith.constant 0 : i32
    %c0_i32_0 = arith.constant 0 : i32
    %c0_i32_1 = arith.constant 0 : i32
    return %c0_i32, %c0_i32_0 : i32, i32
  }
  func.func @transform_5(%arg0: i32) -> (i32, i32) {
    %c0_i32 = arith.constant 0 : i32
    %c0_i32_0 = arith.constant 0 : i32
    %c0_i32_1 = arith.constant 0 : i32
    return %c0_i32, %c0_i32_0 : i32, i32
  }
  func.func @transform_6(%arg0: i32) -> (i32, i32) {
    %c0_i32 = arith.constant 0 : i32
    %c0_i32_0 = arith.constant 0 : i32
    %c0_i32_1 = arith.constant 0 : i32
    return %c0_i32, %c0_i32_0 : i32, i32
  }
  func.func @transform_7(%arg0: i32) -> (i32, i32) {
    %c0_i32 = arith.constant 0 : i32
    %c0_i32_0 = arith.constant 0 : i32
    %c0_i32_1 = arith.constant 0 : i32
    return %c0_i32, %c0_i32_0 : i32, i32
  }
  func.func @transform_8(%arg0: i32) -> (i32, i32) {
    %c0_i32 = arith.constant 0 : i32
    %c0_i32_0 = arith.constant 0 : i32
    %c0_i32_1 = arith.constant 0 : i32
    return %c0_i32, %c0_i32_0 : i32, i32
  }
  func.func @transform_9(%arg0: i32) -> (i32, i32) {
    %c0_i32 = arith.constant 0 : i32
    %c0_i32_0 = arith.constant 0 : i32
    %c0_i32_1 = arith.constant 0 : i32
    return %c0_i32, %c0_i32_0 : i32, i32
  }
  func.func @transform_10(%arg0: i32) -> (i32, i32) {
    %c0_i32 = arith.constant 0 : i32
    %c0_i32_0 = arith.constant 0 : i32
    %c0_i32_1 = arith.constant 0 : i32
    return %c0_i32, %c0_i32_0 : i32, i32
  }
  func.func @transform_11(%arg0: i32) -> (i32, i32) {
    %c0_i32 = arith.constant 0 : i32
    %c0_i32_0 = arith.constant 0 : i32
    %c0_i32_1 = arith.constant 0 : i32
    return %c0_i32, %c0_i32_0 : i32, i32
  }
  func.func @transform_12(%arg0: i32) -> (i32, i32) {
    %c0_i32 = arith.constant 0 : i32
    %c0_i32_0 = arith.constant 0 : i32
    %c0_i32_1 = arith.constant 0 : i32
    return %c0_i32, %c0_i32_0 : i32, i32
  }
  func.func @transform_13(%arg0: i32) -> (i32, i32) {
    %c0_i32 = arith.constant 0 : i32
    %c0_i32_0 = arith.constant 0 : i32
    return %c0_i32, %arg0 : i32, i32
  }
}

</mosaic_0001>

<bundles_post_ra>
// kernel: tpu_custom_call.1
= control target key start
LH: loop header
LB: loop body
LE: loop exit
PB: predicated region body
PF: predicated region fallthrough
CT: control target
= control target key end

     0   :  { %s3873_s0 = inlined_call_operand.vmem [shape: f32[500,32], index: 0, kind: input, shape index: {}]   ;;  %s3874_s1 = inlined_call_operand.vmem [shape: f32[500,4], index: 1, kind: input, shape index: {}]   ;;  %s3875_s2 = inlined_call_operand.vmem [shape: bf16[4,128], index: 2, kind: input, shape index: {}]   ;;  %s3876_s3 = inlined_call_operand.vmem [shape: bf16[32,128], index: 3, kind: input, shape index: {}]   ;;  %s3877_s4 = inlined_call_operand.vmem [shape: f32[1,128], index: 4, kind: input, shape index: {}]   ;;  %s3878_s5 = inlined_call_operand.vmem [shape: bf16[128,128], index: 5, kind: input, shape index: {}]   ;;  %s3879_s6 = inlined_call_operand.vmem [shape: f32[1,128], index: 6, kind: input, shape index: {}]   ;;  %s3880_s7 = inlined_call_operand.vmem [shape: bf16[128,128], index: 7, kind: input, shape index: {}]   ;;  %s3881_s8 = inlined_call_operand.vmem [shape: f32[1,128], index: 8, kind: input, shape index: {}]   ;;  %s3882_s9 = inlined_call_operand.vmem [shape: bf16[128,128], index: 9, kind: input, shape index: {}]   ;;  %s3883_s10 = inlined_call_operand.vmem [shape: f32[1,128], index: 10, kind: input, shape index: {}]   ;;  %s3884_s11 = inlined_call_operand.vmem [shape: bf16[128,128], index: 11, kind: input, shape index: {}]   ;;  %s3885_s12 = inlined_call_operand.vmem [shape: bf16[4,128], index: 12, kind: input, shape index: {}]   ;;  %s3886_s13 = inlined_call_operand.hbm [shape: f32[8,500], index: 13, kind: output, shape index: {}]  }
   0x1   :  { %3888 = sst [smem:[#allocation5_spill]] %s3873_s0 }
   0x2   :  { %3889 = sst [smem:[#allocation6_spill]] %s3874_s1 }
   0x3   :  { %3890 = sst [smem:[#allocation7_spill]] %s3875_s2 }
   0x4   :  { %3891 = sst [smem:[#allocation8_spill]] %s3876_s3 }
   0x5   :  { %18 = vsyncpa [#allocation3], 0 }
   0x6   :  { %20 = vsyncpa [#allocation3 + $0x1], 0  ;;  %s3268_s25 = smov 0   ;;  %s3270_s26 = smov 0  }
   0x7   :  { %s3272_s27 = smov 0   ;;  %s3274_s28 = smov 0  }
   0x8 LB: > { %s3289_s29 = sadd.s32 4294967295, %s3195_s28   ;;  %s2511_s30 = sadd.s32 4294967294, %s3195_s28   ;;  %s3195_s28 = sphi %s3274_s28, %s3902_s28   ;;  %s3191_s27 = sphi %s3272_s27, %s3901_s27   ;;  %s3187_s26 = sphi %s3270_s26, %s3900_s26   ;;  %s3183_s25 = sphi %s3268_s25, %s3899_s25  }
   0x9   : > { %s3293_s14 = sadd.s32 1, %s3195_s28   ;;  %s316_s15 = sadd.s32 1, %s3191_s27 }
   0xa   : > { %s313_s16 = ssub.s32 %s3195_s28, %s3293_s14  ;;  %p326_p0 = scmp.ne.s32.totalorder %s3191_s27, %s3187_s26 }
   0xb   : > { %p314_p1 = scmp.eq.s32.totalorder %s313_s16, 0  ;;  %p327_p2 = scmp.eq.s32.totalorder %s3289_s29, 1 }
   0xc   : > { %p332_p3 = scmp.ne.s32.totalorder %s3187_s26, %s3183_s25  ;;  %p333_p4 = scmp.eq.s32.totalorder %s2511_s30, 1 }
   0xd   : > { %s3304_s17 = scalar_select %p314_p1, %s3191_s27, %s316_s15  }
   0xe   : > { %p3306_p5 = por %p327_p2, %p326_p0  ;;  %p3310_p6 = por %p333_p4, %p332_p3 }
   0xf   : > { %p2514_p7 = scmp.ge.s32.totalorder %s3195_s28, 1  ;;  %p418_p8 = scmp.lt.s32.totalorder %s3195_s28, 3 }
  0x11   : > { %p419_p9 = pnand %p2514_p7, %p418_p8 }
  0x12   : > { %s3894_s3 = sld [smem:[#allocation8_spill]] (!%p419_p9)  ;;  %s2516_s22 = sshll.u32 (!%p419_p9), %s3289_s29, 5 }
  0x13   : > { %422 = sbr.rel (%p419_p9) target bundleno = 1226 (0x4ca), region = 72  ;;  %p480_p10 = scmp.lt.s32.totalorder (!%p419_p9), %s2516_s22, 62 }
  0x14   : > { %s3895_s0 = sld [smem:[#allocation5_spill]] (!%p419_p9) }
  0x15   : > { %s3896_s2 = sld [smem:[#allocation7_spill]] (!%p419_p9) }
  0x16   : > { %s3898_s1 = sld [smem:[#allocation6_spill]] (!%p419_p9) }
  0x18   : > { %v3101_v0 = vld [vmem:[%s3894_s3 + $0x8] sm:$0xff]   ;;  %v3102_v1 = vld [vmem:[%s3894_s3] sm:$0xff]   ;;  %s3904_s22 = smov (!%p480_p10, %s2516_s22), 62  ;;  %v3103_v2 = vld [vmem:[%s3878_s5 + $0x38] sm:$0xff]   ;;  %vm576_vm0 = vcmask 261120   ;;  %vm1756_vm1 = vcmask 1041408  }
  0x19   : > { %2760 = vmatprep.subr.bf16.mxu0 %v3101_v0  ;;  %3056 = vmatprep.subr.bf16.mxu1 %v3101_v0  ;;  %s3887_s16 = sshll.u32 %s3904_s22, 3  ;;  %v3104_v24 = vld [vmem:[%s3878_s5 + $0x30] sm:$0xff]   ;;  %v3105_v30 = vld [vmem:[%s3878_s5 + $0x28] sm:$0xff]   ;;  %v3106_v38 = vld [vmem:[%s3878_s5 + $0x20] sm:$0xff]   ;;  %s3897_s20 = sshll.u32 %s3904_s22, 3  ;;  %vm1707_vm2 = vcmask 31744  }
  0x1a   : > { %2761 = vmatpush3.bf16.msra.mxu0 %v3101_v0  ;;  %3058 = vmatpush3.bf16.msra.mxu1 %v3101_v0  ;;  %s3334_s23 = scalar_lea.vmem %s3895_s0, %s3887_s16  ;;  %v3107_v46 = vld [vmem:[%s3878_s5 + $0x18] sm:$0xff]   ;;  %v3108_v55 = vld [vmem:[%s3878_s5 + $0x10] sm:$0xff]   ;;  %v3109_v56 = vld [vmem:[%s3878_s5 + $0x8] sm:$0xff]   ;;  %s472_s0 = sand.u32 1, %s3187_s26  }
  0x1b   : > { %2762 = vmatprep.subr.bf16.mxu0 %v3102_v1  ;;  %3057 = vmatprep.subr.bf16.mxu1 %v3102_v1  ;;  %v505_v3 = vld [vmem:[%s3334_s23] sm:$0xff]  ;;  %v506_v4 = vld [vmem:[%s3334_s23 + $0x8] sm:$0xff]  ;;  %v507_v5 = vld [vmem:[%s3334_s23 + $0x10] sm:$0xff]  ;;  %s2515_s16 = sshll.u32 %s472_s0, 4  ;;  %s2611_s3 = sshll.u32 %s3289_s29, 8 }
  0x1c   : > { %v537_v6 = vpack.c.bf16 %v506_v4, %v505_v3  ;;  %v508_v7 = vld [vmem:[%s3334_s23 + $0x18] sm:$0xff]  ;;  %v509_v8 = vld [vmem:[%s3334_s23 + $0x20] sm:$0xff]  ;;  %v510_v9 = vld [vmem:[%s3334_s23 + $0x28] sm:$0xff]  ;;  %s3546_s24 = scalar_lea.vmem %s3898_s1, %s3897_s20  ;;  %s474_s20 = scalar_lea.vmem [#allocation2], %s2515_s16 }
  0x1d   : > { %v538_v10 = vpack.c.bf16 %v508_v7, %v507_v5  ;;  %v539_v11 = vpack.c.bf16 %v510_v9, %v509_v8  ;;  %v511_v12 = vld [vmem:[%s3334_s23 + $0x30] sm:$0xff]  ;;  %v512_v13 = vld [vmem:[%s3334_s23 + $0x38] sm:$0xff]  ;;  %v513_v14 = vld [vmem:[%s3334_s23 + $0x40] sm:$0xff]  ;;  %s2440_s21 = sshll.u32 %s474_s20, 4  ;;  %s2426_s22 = scalar_lea.sflag [#allocation3], %s472_s0  ;;  %s3835_s21 = int_to_ptr.vmem [resolvable:$true] %s2440_s21 }
  0x1e   : > { %2763 = vmatpush3.bf16.msra.mxu0 %v3102_v1  ;;  %3059 = vmatpush3.bf16.msra.mxu1 %v3102_v1  ;;  %v514_v15 = vld [vmem:[%s3334_s23 + $0x48] sm:$0xff]  ;;  %v521_v16 = vld [vmem:[%s3334_s23 + $0x80] sm:$0xff]  ;;  %v523_v19 = vld [vmem:[%s3334_s23 + $0x90] sm:$0xff]  ;;  %v540_v25 = vpack.c.bf16 %v512_v13, %v511_v12  ;;  %s3135_s15 = scalar_lea.vmem %s3835_s21, 256  ;;  %s3197_s16 = smov [#allocation2]  }
  0x1f   : > { %2796 = vmatprep.subr.bf16.mxu1 %v3103_v2  ;;  %2764 = vmatprep.mubr.msk.bf16.mxu0 %vm576_vm0, %v537_v6  ;;  %v522_v17 = vld [vmem:[%s3334_s23 + $0x88] sm:$0xff]  ;;  %v524_v20 = vld [vmem:[%s3334_s23 + $0x98] sm:$0xff]  ;;  %v525_v21 = vld [vmem:[%s3334_s23 + $0xa0] sm:$0xff]  ;;  %v541_v27 = vpack.c.bf16 %v514_v15, %v513_v14  ;;  %p3136_p11 = scmp.ne.s32.totalorder %s3835_s21, %s3135_s15  ;;  %s3139_s1 = sshll.u32 %s3197_s16, 4  ;;  %s3140_s1 = int_to_ptr.vmem [resolvable:$false] %s3139_s1 }
  0x20   : > { %v545_v18 = vpack.c.bf16 %v522_v17, %v521_v16  ;;  %v546_v22 = vpack.c.bf16 %v524_v20, %v523_v19  ;;  %v526_v23 = vld [vmem:[%s3334_s23 + $0xa8] sm:$0xff]  ;;  %v527_v28 = vld [vmem:[%s3334_s23 + $0xb0] sm:$0xff]  ;;  %v528_v29 = vld [vmem:[%s3334_s23 + $0xb8] sm:$0xff]  ;;  %s3141_s29 = scalar_lea.vmem %s3140_s1, 512  ;;  %p3142_p0 = scmp.lt.s32.totalorder %s3835_s21, %s3140_s1 }
  0x21   : > { %2765 = vmatmul.mubr.msk.bf16.vlgmr.msra.gmra.mxu0 %vm576_vm0, %v538_v10  ;;  %v547_v26 = vpack.c.bf16 %v526_v23, %v525_v21  ;;  %v529_v31 = vld [vmem:[%s3334_s23 + $0xc0] sm:$0xff]  ;;  %v530_v32 = vld [vmem:[%s3334_s23 + $0xc8] sm:$0xff]  ;;  %v515_v33 = vld [vmem:[%s3334_s23 + $0x50] sm:$0xff]  ;;  %v548_v37 = vpack.c.bf16 %v528_v29, %v527_v28  ;;  %p3137_p12 = pnand %p3136_p11, %p3306_p5  ;;  %p3143_p1 = scmp.lt.s32.totalorder %s3141_s29, %s3135_s15 }
  0x22   : > { %2768 = vmatprep.mubr.msk.bf16.mxu0 %vm576_vm0, %v539_v11  ;;  %2780 = vmatprep.mubr.msk.bf16.mxu1 %vm576_vm0, %v545_v18  ;;  %v516_v34 = vld [vmem:[%s3334_s23 + $0x58] sm:$0xff]  ;;  %v517_v35 = vld [vmem:[%s3334_s23 + $0x60] sm:$0xff]  ;;  %v518_v36 = vld [vmem:[%s3334_s23 + $0x68] sm:$0xff]  ;;  %v549_v39 = vpack.c.bf16 %v530_v32, %v529_v31 }
  0x23   : > { %2781 = vmatmul.mubr.msk.bf16.vlgmr.msra.gmra.mxu1 %vm576_vm0, %v546_v22  ;;  %v542_v40 = vpack.c.bf16 %v516_v34, %v515_v33  ;;  %v531_v41 = vld [vmem:[%s3334_s23 + $0xd0] sm:$0xff]  ;;  %v532_v42 = vld [vmem:[%s3334_s23 + $0xd8] sm:$0xff]  ;;  %v543_v43 = vpack.c.bf16 %v518_v36, %v517_v35  ;;  %v533_v44 = vld [vmem:[%s3334_s23 + $0xe0] sm:$0xff]  ;;  %p3138_p13 = pneg %p3137_p12  ;;  %p3144_p2 = por %p3143_p1, %p3142_p0 }
  0x24   : > { %2784 = vmatprep.mubr.msk.bf16.mxu1 %vm576_vm0, %v547_v26  ;;  %2797 = vmatpush3.bf16.msra.mxu1 %v3103_v2  ;;  %v534_v45 = vld [vmem:[%s3334_s23 + $0xe8] sm:$0xff]  ;;  %v519_v47 = vld [vmem:[%s3334_s23 + $0x70] sm:$0xff]  ;;  %v520_v48 = vld [vmem:[%s3334_s23 + $0x78] sm:$0xff]  ;;  %v550_v49 = vpack.c.bf16 %v532_v42, %v531_v41 }
  0x25   : > { %2798 = vmatprep.subr.bf16.mxu1 %v3104_v24  ;;  %v551_v50 = vpack.c.bf16 %v534_v45, %v533_v44  ;;  %v544_v51 = vpack.c.bf16 %v520_v48, %v519_v47  ;;  %v535_v52 = vld [vmem:[%s3334_s23 + $0xf0] sm:$0xff]  ;;  %v536_v53 = vld [vmem:[%s3334_s23 + $0xf8] sm:$0xff]  ;;  %v3110_v57 = vld [vmem:[%s3878_s5] sm:$0xff]   ;;  %s2438_s23 = scalar_lea.hbm %s3886_s13, %s2611_s3  ;;  %p3145_p3 = pnand %p3144_p2, %p3138_p13 }
  0x26   : > { %v552_v54 = vpack.c.bf16 %v536_v53, %v535_v52  ;;  %v3111_v58 = vld [vmem:[%s3880_s7 + $0x38] sm:$0xff]   ;;  %v3112_v59 = vld [vmem:[%s3880_s7 + $0x30] sm:$0xff]   ;;  %v3113_v60 = vld [vmem:[%s3880_s7 + $0x28] sm:$0xff]  }
  0x27   : > { %2844 = vmatprep.subr.bf16.mxu0 %v3111_v58  ;;  %v3114_v61 = vld [vmem:[%s3880_s7 + $0x20] sm:$0xff]   ;;  %v3115_v62 = vld [vmem:[%s3880_s7 + $0x18] sm:$0xff]  }
  0x28   : > { %2799 = vmatpush3.bf16.msra.mxu1 %v3104_v24  ;;  %2845 = vmatpush3.bf16.msra.mxu0 %v3111_v58  ;;  %v3423_v1 = vld [vmem:[%s3877_s4] ss:$0 sm:$0xff] }
  0x29   : > { %2769 = vmatmul.mubr.msk.bf16.gmra.mxu0 %vm576_vm0, %v540_v25  ;;  %2800 = vmatprep.subr.bf16.mxu1 %v3105_v30 }
  0x2a   : > { %2772 = vmatprep.mubr.msk.bf16.mxu0 %vm576_vm0, %v541_v27  ;;  %2846 = vmatprep.subr.bf16.mxu0 %v3112_v59 }
  0x2b   : > { %2785 = vmatmul.mubr.msk.bf16.gmra.mxu1 %vm576_vm0, %v548_v37 }
  0x2c   : > { %2788 = vmatprep.mubr.msk.bf16.mxu1 %vm576_vm0, %v549_v39  ;;  %2801 = vmatpush3.bf16.msra.mxu1 %v3105_v30 }
  0x2d   : > { %2802 = vmatprep.subr.bf16.mxu1 %v3106_v38  ;;  %2847 = vmatpush3.bf16.msra.mxu0 %v3112_v59 }
  0x2e   : > { %2848 = vmatprep.subr.bf16.mxu0 %v3113_v60 }
  0x30   : > { %2803 = vmatpush3.bf16.msra.mxu1 %v3106_v38 }
  0x31   : > { %2773 = vmatmul.mubr.msk.bf16.gmra.mxu0 %vm576_vm0, %v542_v40  ;;  %2804 = vmatprep.subr.bf16.mxu1 %v3107_v46 }
  0x32   : > { %2776 = vmatprep.mubr.msk.bf16.mxu0 %vm576_vm0, %v543_v43  ;;  %2849 = vmatpush3.bf16.msra.mxu0 %v3113_v60 }
  0x33   : > { %2789 = vmatmul.mubr.msk.bf16.gmra.mxu1 %vm576_vm0, %v550_v49  ;;  %2850 = vmatprep.subr.bf16.mxu0 %v3114_v61 }
  0x34   : > { %2792 = vmatprep.mubr.msk.bf16.mxu1 %vm576_vm0, %v551_v50  ;;  %2805 = vmatpush3.bf16.msra.mxu1 %v3107_v46 }
  0x35   : > { %2806 = vmatprep.subr.bf16.mxu1 %v3108_v55 }
  0x36   : > { %2851 = vmatpush3.bf16.msra.mxu0 %v3114_v61 }
  0x37   : > { %2852 = vmatprep.subr.bf16.mxu0 %v3115_v62 }
  0x38   : > { %2807 = vmatpush3.bf16.msra.mxu1 %v3108_v55 }
  0x39   : > { %2777 = vmatmul.mubr.msk.bf16.gmra.mxu0 %vm576_vm0, %v544_v51  ;;  %2808 = vmatprep.subr.bf16.mxu1 %v3109_v56 }
  0x3a   : > { %2853 = vmatpush3.bf16.msra.mxu0 %v3115_v62 }
  0x3b   : > { %2793 = vmatmul.mubr.msk.bf16.gmra.mxu1 %vm576_vm0, %v552_v54 }
  0x3c   : > { %2809 = vmatpush3.bf16.msra.mxu1 %v3109_v56 }
  0x3d   : > { %2810 = vmatprep.subr.bf16.mxu1 %v3110_v57 }
  0x40   : > { %2811 = vmatpush3.bf16.msra.mxu1 %v3110_v57 }
  0xe1   : > { %v2766_v63 = vpop.f32.mrf.mxu0 }
  0xe2   : > { %v668_v6 = vadd.f32 %v2766_v63, %v3423_v1 }
  0xe3   : > { %v659_v0 = vpop.f32.mrf.mxu0  ;;  %v3427_v5 = vpop.f32.mrf.mxu1 }
  0xe4   : > { %v660_v3 = vadd.f32 %v3423_v1, %v659_v0  ;;  %v788_v15 = vmax.f32 %v668_v6, 0.0 }
  0xe5   : > { %v2767_v2 = vpop.f32.mrf.mxu0  ;;  %v723_v9 = vpop.f32.mrf.mxu1 }
  0xe6   : > { %v671_v4 = vadd.f32 %v2767_v2, %v3423_v1  ;;  %v786_v12 = vmax.f32 %v660_v3, 0.0  ;;  %v724_v53 = vadd.f32 %v3423_v1, %v723_v9 }
  0xe7   : > { %v662_v7 = vpop.f32.mrf.mxu0  ;;  %v3431_v14 = vpop.f32.mrf.mxu1 }
  0xe8   : > { %v663_v8 = vadd.f32 %v3423_v1, %v662_v7  ;;  %v789_v10 = vmax.f32 %v671_v4, 0.0  ;;  %v802_v62 = vmax.f32 %v724_v53, 0.0  ;;  %v3120_v53 = vld [vmem:[%s3882_s9 + $0x30] sm:$0xff]  }
  0xe9   : > { %v2770_v11 = vpop.f32.mrf.mxu0  ;;  %v726_v18 = vpop.f32.mrf.mxu1 }
  0xea   : > { %v787_v13 = vmax.f32 %v663_v8, 0.0  ;;  %v819_v19 = vpack.c.bf16 %v789_v10, %v788_v15  ;;  %v684_v24 = vadd.f32 %v2770_v11, %v3423_v1  ;;  %v727_v54 = vadd.f32 %v3423_v1, %v726_v18 }
  0xeb   : > { %v675_v16 = vpop.f32.mrf.mxu0  ;;  %v3435_v23 = vpop.f32.mrf.mxu1  ;;  %v735_v15 = vadd.f32 %v3431_v14, %v3423_v1 }
  0xec   : > { %v818_v17 = vpack.c.bf16 %v787_v13, %v786_v12  ;;  %v676_v21 = vadd.f32 %v3423_v1, %v675_v16  ;;  %v792_v33 = vmax.f32 %v684_v24, 0.0  ;;  %v803_v0 = vmax.f32 %v727_v54, 0.0  ;;  %v3121_v54 = vld [vmem:[%s3882_s9 + $0x28] sm:$0xff]  }
  0xed   : > { %v2771_v20 = vpop.f32.mrf.mxu0  ;;  %v739_v27 = vpop.f32.mrf.mxu1  ;;  %v732_v12 = vadd.f32 %v3427_v5, %v3423_v1 }
  0xee   : > { %v687_v22 = vadd.f32 %v2771_v20, %v3423_v1  ;;  %2812 = vmatprep.mubr.bf16.mxu1 %v818_v17  ;;  %v790_v30 = vmax.f32 %v676_v21, 0.0  ;;  %v826_v9 = vpack.c.bf16 %v803_v0, %v802_v62  ;;  %v740_v10 = vadd.f32 %v3423_v1, %v739_v27 }
  0xef   : > { %v678_v25 = vpop.f32.mrf.mxu0  ;;  %2813 = vmatmul.mubr.bf16.vlgmr.msra.gmra.mxu1 %v819_v19  ;;  %v2787_v32 = vpop.f32.mrf.mxu1  ;;  %v804_v19 = vmax.f32 %v732_v12, 0.0  ;;  %v805_v20 = vmax.f32 %v735_v15, 0.0 }
  0xf0   : > { %v679_v26 = vadd.f32 %v3423_v1, %v678_v25  ;;  %v793_v28 = vmax.f32 %v687_v22, 0.0  ;;  %v806_v17 = vmax.f32 %v740_v10, 0.0  ;;  %v748_v22 = vadd.f32 %v3435_v23, %v3423_v1 }
  0xf1   : > { %v2774_v29 = vpop.f32.mrf.mxu0  ;;  %v742_v36 = vpop.f32.mrf.mxu1  ;;  %v751_v24 = vadd.f32 %v2787_v32, %v3423_v1  ;;  %v827_v14 = vpack.c.bf16 %v805_v20, %v804_v19 }
  0xf2   : > { %v791_v31 = vmax.f32 %v679_v26, 0.0  ;;  %v821_v37 = vpack.c.bf16 %v793_v28, %v792_v33  ;;  %v700_v42 = vadd.f32 %v2774_v29, %v3423_v1  ;;  %v743_v11 = vadd.f32 %v3423_v1, %v742_v36 }
  0xf3   : > { %v691_v34 = vpop.f32.mrf.mxu0  ;;  %v3441_v41 = vpop.f32.mrf.mxu1  ;;  %v808_v28 = vmax.f32 %v748_v22, 0.0  ;;  %v809_v29 = vmax.f32 %v751_v24, 0.0 }
  0xf4   : > { %v820_v35 = vpack.c.bf16 %v791_v31, %v790_v30  ;;  %v692_v39 = vadd.f32 %v3423_v1, %v691_v34  ;;  %v796_v50 = vmax.f32 %v700_v42, 0.0  ;;  %v807_v18 = vmax.f32 %v743_v11, 0.0 }
  0xf5   : > { %v2775_v38 = vpop.f32.mrf.mxu0  ;;  %v755_v47 = vpop.f32.mrf.mxu1  ;;  %v829_v34 = vpack.c.bf16 %v809_v29, %v808_v28  ;;  %v764_v23 = vadd.f32 %v3441_v41, %v3423_v1 }
  0xf6   : > { %v703_v40 = vadd.f32 %v2775_v38, %v3423_v1  ;;  %2816 = vmatprep.mubr.bf16.mxu1 %v820_v35  ;;  %v794_v48 = vmax.f32 %v692_v39, 0.0  ;;  %v828_v25 = vpack.c.bf16 %v807_v18, %v806_v17  ;;  %v756_v5 = vadd.f32 %v3423_v1, %v755_v47 }
  0xf7   : > { %v694_v43 = vpop.f32.mrf.mxu0  ;;  %2817 = vmatmul.mubr.bf16.gmra.mxu1 %v821_v37  ;;  %v2791_v57 = vpop.f32.mrf.mxu1  ;;  %v812_v38 = vmax.f32 %v764_v23, 0.0 }
  0xf8   : > { %v695_v44 = vadd.f32 %v3423_v1, %v694_v43  ;;  %v797_v45 = vmax.f32 %v703_v40, 0.0  ;;  %v810_v30 = vmax.f32 %v756_v5, 0.0  ;;  %v767_v32 = vadd.f32 %v2791_v57, %v3423_v1  ;;  %v3124_v57 = vld [vmem:[%s3882_s9 + $0x10] sm:$0xff]  }
  0xf9   : > { %v2778_v46 = vpop.f32.mrf.mxu0  ;;  %v758_v3 = vpop.f32.mrf.mxu1 }
  0xfa   : > { %v795_v49 = vmax.f32 %v695_v44, 0.0  ;;  %v823_v55 = vpack.c.bf16 %v797_v45, %v796_v50  ;;  %v716_v60 = vadd.f32 %v2778_v46, %v3423_v1  ;;  %v759_v26 = vadd.f32 %v3423_v1, %v758_v3  ;;  %v3117_v50 = vld [vmem:[%s3880_s7 + $0x8] sm:$0xff]  }
  0xfb   : > { %v707_v51 = vpop.f32.mrf.mxu0  ;;  %v2794_v16 = vpop.f32.mrf.mxu1  ;;  %v813_v39 = vmax.f32 %v767_v32, 0.0 }
  0xfc   : > { %v822_v52 = vpack.c.bf16 %v795_v49, %v794_v48  ;;  %v708_v58 = vadd.f32 %v3423_v1, %v707_v51  ;;  %v800_v7 = vmax.f32 %v716_v60, 0.0  ;;  %v811_v31 = vmax.f32 %v759_v26, 0.0  ;;  %v3116_v49 = vld [vmem:[%s3880_s7 + $0x10] sm:$0xff]   ;;  %v3119_v51 = vld [vmem:[%s3882_s9 + $0x38] sm:$0xff]  }
  0xfd   : > { %v2779_v56 = vpop.f32.mrf.mxu0  ;;  %v771_v21 = vpop.f32.mrf.mxu1  ;;  %v831_v43 = vpack.c.bf16 %v813_v39, %v812_v38  ;;  %v780_v44 = vadd.f32 %v2794_v16, %v3423_v1  ;;  %2854 = vmatprep.subr.bf16.mxu0 %v3116_v49  ;;  %2892 = vmatprep.subr.bf16.mxu1 %v3119_v51 }
  0xfe   : > { %v719_v59 = vadd.f32 %v2779_v56, %v3423_v1  ;;  %2820 = vmatprep.mubr.bf16.mxu1 %v822_v52  ;;  %v798_v4 = vmax.f32 %v708_v58, 0.0  ;;  %v830_v35 = vpack.c.bf16 %v811_v31, %v810_v30  ;;  %v772_v36 = vadd.f32 %v3423_v1, %v771_v21  ;;  %2855 = vmatpush3.bf16.msra.mxu0 %v3116_v49  ;;  %v1706_v52 = vld [vmem:[%s3896_s2] sm:$0x3]  ;;  %v3123_v56 = vld [vmem:[%s3882_s9 + $0x18] sm:$0xff]   ;;  %v3125_v58 = vld [vmem:[%s3882_s9 + $0x8] sm:$0xff]  }
  0xff   : > { %v710_v61 = vpop.f32.mrf.mxu0  ;;  %2821 = vmatmul.mubr.bf16.gmra.mxu1 %v823_v55  ;;  %v2795_v27 = vpop.f32.mrf.mxu1  ;;  %v816_v41 = vmax.f32 %v780_v44, 0.0  ;;  %2856 = vmatprep.subr.bf16.mxu0 %v3117_v50  ;;  %v3122_v55 = vld [vmem:[%s3882_s9 + $0x20] sm:$0xff]   ;;  %v1758_v16 = vsel %vm1756_vm1, %v1706_v52, 0 }
 0x100   : > { %v711_v63 = vadd.f32 %v3423_v1, %v710_v61  ;;  %v801_v2 = vmax.f32 %v719_v59, 0.0  ;;  %v814_v40 = vmax.f32 %v772_v36, 0.0  ;;  %v783_v45 = vadd.f32 %v2795_v27, %v3423_v1  ;;  %2893 = vmatpush3.bf16.msra.mxu1 %v3119_v51  ;;  %v3506_v61 = vld [vmem:[%s3879_s6] ss:$0 sm:$0xff] }
 0x101   : > { %v774_v33 = vpop.f32.mrf.mxu1  ;;  %2894 = vmatprep.subr.bf16.mxu1 %v3120_v53 }
 0x102   : > { %v799_v6 = vmax.f32 %v711_v63, 0.0  ;;  %v825_v13 = vpack.c.bf16 %v801_v2, %v800_v7  ;;  %v775_v37 = vadd.f32 %v3423_v1, %v774_v33  ;;  %v817_v47 = vmax.f32 %v783_v45, 0.0  ;;  %2857 = vmatpush3.bf16.msra.mxu0 %v3117_v50  ;;  %v3118_v1 = vld [vmem:[%s3880_s7] sm:$0xff]  }
 0x103   : > { %2858 = vmatprep.subr.bf16.mxu0 %v3118_v1 }
 0x104   : > { %v824_v8 = vpack.c.bf16 %v799_v6, %v798_v4  ;;  %v815_v42 = vmax.f32 %v775_v37, 0.0  ;;  %v833_v48 = vpack.c.bf16 %v817_v47, %v816_v41  ;;  %2895 = vmatpush3.bf16.msra.mxu1 %v3120_v53 }
 0x105   : > { %2896 = vmatprep.subr.bf16.mxu1 %v3121_v54 }
 0x106   : > { %2824 = vmatprep.mubr.bf16.mxu1 %v824_v8  ;;  %v832_v46 = vpack.c.bf16 %v815_v42, %v814_v40  ;;  %2859 = vmatpush3.bf16.msra.mxu0 %v3118_v1 }
 0x107   : > { %2825 = vmatmul.mubr.bf16.gmra.mxu1 %v825_v13  ;;  %3060 = vmatprep.subr.msk.bf16.mxu0 %vm1756_vm1, %v1706_v52 }
 0x108   : > { %2828 = vmatprep.mubr.bf16.mxu1 %v826_v9  ;;  %2897 = vmatpush3.bf16.msra.mxu1 %v3121_v54 }
 0x109   : > { %2898 = vmatprep.subr.bf16.mxu1 %v3122_v55 }
 0x10c   : > { %2899 = vmatpush3.bf16.msra.mxu1 %v3122_v55 }
 0x10d   : > { %2900 = vmatprep.subr.bf16.mxu1 %v3123_v56 }
 0x10f   : > { %2829 = vmatmul.mubr.bf16.gmra.mxu1 %v827_v14 }
 0x110   : > { %2832 = vmatprep.mubr.bf16.mxu1 %v828_v25  ;;  %2901 = vmatpush3.bf16.msra.mxu1 %v3123_v56 }
 0x111   : > { %2902 = vmatprep.subr.bf16.mxu1 %v3124_v57 }
 0x114   : > { %2903 = vmatpush3.bf16.msra.mxu1 %v3124_v57 }
 0x115   : > { %2904 = vmatprep.subr.bf16.mxu1 %v3125_v58 }
 0x117   : > { %2833 = vmatmul.mubr.bf16.gmra.mxu1 %v829_v34 }
 0x118   : > { %2836 = vmatprep.mubr.bf16.mxu1 %v830_v35  ;;  %2905 = vmatpush3.bf16.msra.mxu1 %v3125_v58 }
 0x11f   : > { %2837 = vmatmul.mubr.bf16.gmra.mxu1 %v831_v43 }
 0x120   : > { %2840 = vmatprep.mubr.bf16.mxu1 %v832_v46 }
 0x127   : > { %2841 = vmatmul.mubr.bf16.gmra.mxu1 %v833_v48 }
 0x1af   : > { %v2814_v59 = vpop.f32.mrf.mxu1 }
 0x1b0   : > { %v948_v2 = vadd.f32 %v2814_v59, %v3506_v61 }
 0x1b1   : > { %v939_v60 = vpop.f32.mrf.mxu1 }
 0x1b2   : > { %v940_v63 = vadd.f32 %v3506_v61, %v939_v60  ;;  %v1068_v10 = vmax.f32 %v948_v2, 0.0 }
 0x1b3   : > { %v2815_v62 = vpop.f32.mrf.mxu1 }
 0x1b4   : > { %v951_v0 = vadd.f32 %v2815_v62, %v3506_v61  ;;  %v1066_v8 = vmax.f32 %v940_v63, 0.0 }
 0x1b5   : > { %v942_v3 = vpop.f32.mrf.mxu1 }
 0x1b6   : > { %v943_v4 = vadd.f32 %v3506_v61, %v942_v3  ;;  %v1069_v6 = vmax.f32 %v951_v0, 0.0 }
 0x1b7   : > { %v2818_v7 = vpop.f32.mrf.mxu1 }
 0x1b8   : > { %v1067_v9 = vmax.f32 %v943_v4, 0.0  ;;  %v1099_v13 = vpack.c.bf16 %v1069_v6, %v1068_v10  ;;  %v964_v19 = vadd.f32 %v2818_v7, %v3506_v61 }
 0x1b9   : > { %v955_v11 = vpop.f32.mrf.mxu1 }
 0x1ba   : > { %v1098_v12 = vpack.c.bf16 %v1067_v9, %v1066_v8  ;;  %v956_v17 = vadd.f32 %v3506_v61, %v955_v11  ;;  %v1072_v26 = vmax.f32 %v964_v19, 0.0 }
 0x1bb   : > { %v2819_v15 = vpop.f32.mrf.mxu1 }
 0x1bc   : > { %v967_v18 = vadd.f32 %v2819_v15, %v3506_v61  ;;  %2860 = vmatprep.mubr.bf16.mxu0 %v1098_v12  ;;  %v1070_v25 = vmax.f32 %v956_v17, 0.0 }
 0x1bd   : > { %v958_v20 = vpop.f32.mrf.mxu1  ;;  %2861 = vmatmul.mubr.bf16.vlgmr.msra.gmra.mxu0 %v1099_v13 }
 0x1be   : > { %v959_v21 = vadd.f32 %v3506_v61, %v958_v20  ;;  %2941 = vmatpush3.bf16.msra.mxu0 %v1758_v16  ;;  %v1073_v22 = vmax.f32 %v967_v18, 0.0 }
 0x1bf   : > { %v2822_v24 = vpop.f32.mrf.mxu1 }
 0x1c0   : > { %v1071_v5 = vmax.f32 %v959_v21, 0.0  ;;  %v1101_v28 = vpack.c.bf16 %v1073_v22, %v1072_v26  ;;  %v980_v33 = vadd.f32 %v2822_v24, %v3506_v61 }
 0x1c1   : > { %v971_v14 = vpop.f32.mrf.mxu1 }
 0x1c2   : > { %v1100_v27 = vpack.c.bf16 %v1071_v5, %v1070_v25  ;;  %v972_v30 = vadd.f32 %v3506_v61, %v971_v14  ;;  %v1076_v38 = vmax.f32 %v980_v33, 0.0 }
 0x1c3   : > { %v2823_v29 = vpop.f32.mrf.mxu1 }
 0x1c4   : > { %v983_v31 = vadd.f32 %v2823_v29, %v3506_v61  ;;  %2864 = vmatprep.mubr.bf16.mxu0 %v1100_v27  ;;  %v1074_v36 = vmax.f32 %v972_v30, 0.0 }
 0x1c5   : > { %v974_v34 = vpop.f32.mrf.mxu1  ;;  %2865 = vmatmul.mubr.bf16.gmra.mxu0 %v1101_v28 }
 0x1c6   : > { %v975_v23 = vadd.f32 %v3506_v61, %v974_v34  ;;  %v1077_v32 = vmax.f32 %v983_v31, 0.0 }
 0x1c7   : > { %v2826_v35 = vpop.f32.mrf.mxu1 }
 0x1c8   : > { %v1075_v37 = vmax.f32 %v975_v23, 0.0  ;;  %v1103_v42 = vpack.c.bf16 %v1077_v32, %v1076_v38  ;;  %v996_v46 = vadd.f32 %v2826_v35, %v3506_v61 }
 0x1c9   : > { %v987_v39 = vpop.f32.mrf.mxu1 }
 0x1ca   : > { %v1102_v40 = vpack.c.bf16 %v1075_v37, %v1074_v36  ;;  %v988_v44 = vadd.f32 %v3506_v61, %v987_v39  ;;  %v1080_v51 = vmax.f32 %v996_v46, 0.0 }
 0x1cb   : > { %v2827_v43 = vpop.f32.mrf.mxu1 }
 0x1cc   : > { %v999_v45 = vadd.f32 %v2827_v43, %v3506_v61  ;;  %2868 = vmatprep.mubr.bf16.mxu0 %v1102_v40  ;;  %v1078_v50 = vmax.f32 %v988_v44, 0.0 }
 0x1cd   : > { %v990_v41 = vpop.f32.mrf.mxu1  ;;  %2869 = vmatmul.mubr.bf16.gmra.mxu0 %v1103_v42 }
 0x1ce   : > { %v991_v47 = vadd.f32 %v3506_v61, %v990_v41  ;;  %v1081_v48 = vmax.f32 %v999_v45, 0.0 }
 0x1cf   : > { %v2830_v49 = vpop.f32.mrf.mxu1 }
 0x1d0   : > { %v1079_v1 = vmax.f32 %v991_v47, 0.0  ;;  %v1105_v54 = vpack.c.bf16 %v1081_v48, %v1080_v51  ;;  %v1012_v58 = vadd.f32 %v2830_v49, %v3506_v61  ;;  %v1658_v47 = vld [vmem:[%s3546_s24] sm:$0xff]  ;;  %v1659_v48 = vld [vmem:[%s3546_s24 + $0x8] sm:$0xff] }
 0x1d1   : > { %v1003_v52 = vpop.f32.mrf.mxu1  ;;  %v3553_v49 = vpack.c.bf16 %v1659_v48, %v1658_v47 }
 0x1d2   : > { %v1104_v53 = vpack.c.bf16 %v1079_v1, %v1078_v50  ;;  %v1004_v56 = vadd.f32 %v3506_v61, %v1003_v52  ;;  %v1084_v3 = vmax.f32 %v1012_v58, 0.0  ;;  %v1660_v50 = vld [vmem:[%s3546_s24 + $0x10] sm:$0xff]  ;;  %v1661_v1 = vld [vmem:[%s3546_s24 + $0x18] sm:$0xff]  ;;  %v1662_v52 = vld [vmem:[%s3546_s24 + $0x20] sm:$0xff] }
 0x1d3   : > { %v2831_v55 = vpop.f32.mrf.mxu1  ;;  %v3557_v51 = vpack.c.bf16 %v1661_v1, %v1660_v50  ;;  %v1666_v58 = vld [vmem:[%s3546_s24 + $0x40] sm:$0xff] }
 0x1d4   : > { %v1015_v57 = vadd.f32 %v2831_v55, %v3506_v61  ;;  %2872 = vmatprep.mubr.bf16.mxu0 %v1104_v53  ;;  %v1082_v0 = vmax.f32 %v1004_v56, 0.0  ;;  %v1663_v53 = vld [vmem:[%s3546_s24 + $0x28] sm:$0xff]  ;;  %v1664_v55 = vld [vmem:[%s3546_s24 + $0x30] sm:$0xff]  ;;  %v1665_v56 = vld [vmem:[%s3546_s24 + $0x38] sm:$0xff] }
 0x1d5   : > { %v1006_v59 = vpop.f32.mrf.mxu1  ;;  %2873 = vmatmul.mubr.bf16.gmra.mxu0 %v1105_v54  ;;  %v3565_v54 = vpack.c.bf16 %v1663_v53, %v1662_v52 }
 0x1d6   : > { %v1007_v60 = vadd.f32 %v3506_v61, %v1006_v59  ;;  %v1085_v62 = vmax.f32 %v1015_v57, 0.0  ;;  %v3569_v57 = vpack.c.bf16 %v1665_v56, %v1664_v55  ;;  %v1667_v59 = vld [vmem:[%s3546_s24 + $0x48] sm:$0xff] }
 0x1d7   : > { %v2834_v63 = vpop.f32.mrf.mxu1 }
 0x1d8   : > { %v1083_v2 = vmax.f32 %v1007_v60, 0.0  ;;  %v1107_v7 = vpack.c.bf16 %v1085_v62, %v1084_v3  ;;  %v1028_v11 = vadd.f32 %v2834_v63, %v3506_v61  ;;  %v3577_v60 = vpack.c.bf16 %v1667_v59, %v1666_v58  ;;  %v1668_v62 = vld [vmem:[%s3546_s24 + $0x50] sm:$0xff]  ;;  %v1669_v63 = vld [vmem:[%s3546_s24 + $0x58] sm:$0xff]  ;;  %v1671_v3 = vld [vmem:[%s3546_s24 + $0x68] sm:$0xff] }
 0x1d9   : > { %v1019_v4 = vpop.f32.mrf.mxu1 }
 0x1da   : > { %v1106_v6 = vpack.c.bf16 %v1083_v2, %v1082_v0  ;;  %v1020_v9 = vadd.f32 %v3506_v61, %v1019_v4  ;;  %v1088_v19 = vmax.f32 %v1028_v11, 0.0  ;;  %v3581_v0 = vpack.c.bf16 %v1669_v63, %v1668_v62  ;;  %v1670_v2 = vld [vmem:[%s3546_s24 + $0x60] sm:$0xff] }
 0x1db   : > { %v2835_v8 = vpop.f32.mrf.mxu1  ;;  %v3589_v4 = vpack.c.bf16 %v1671_v3, %v1670_v2 }
 0x1dc   : > { %v1031_v10 = vadd.f32 %v2835_v8, %v3506_v61  ;;  %2876 = vmatprep.mubr.bf16.mxu0 %v1106_v6  ;;  %v1086_v17 = vmax.f32 %v1020_v9, 0.0  ;;  %v1672_v6 = vld [vmem:[%s3546_s24 + $0x70] sm:$0xff]  ;;  %v1674_v9 = vld [vmem:[%s3546_s24 + $0x80] sm:$0xff] }
 0x1dd   : > { %v1022_v12 = vpop.f32.mrf.mxu1  ;;  %2877 = vmatmul.mubr.bf16.gmra.mxu0 %v1107_v7  ;;  %v1673_v7 = vld [vmem:[%s3546_s24 + $0x78] sm:$0xff] }
 0x1de   : > { %v1023_v13 = vadd.f32 %v3506_v61, %v1022_v12  ;;  %v1089_v15 = vmax.f32 %v1031_v10, 0.0  ;;  %v3593_v8 = vpack.c.bf16 %v1673_v7, %v1672_v6  ;;  %v1675_v10 = vld [vmem:[%s3546_s24 + $0x88] sm:$0xff]  ;;  %v1676_v12 = vld [vmem:[%s3546_s24 + $0x90] sm:$0xff] }
 0x1df   : > { %v2838_v16 = vpop.f32.mrf.mxu1  ;;  %v3601_v11 = vpack.c.bf16 %v1675_v10, %v1674_v9 }
 0x1e0   : > { %v1087_v18 = vmax.f32 %v1023_v13, 0.0  ;;  %v1044_v20 = vadd.f32 %v2838_v16, %v3506_v61  ;;  %v1109_v25 = vpack.c.bf16 %v1089_v15, %v1088_v19  ;;  %v1677_v13 = vld [vmem:[%s3546_s24 + $0x98] sm:$0xff]  ;;  %v1678_v16 = vld [vmem:[%s3546_s24 + $0xa0] sm:$0xff]  ;;  %v1680_v19 = vld [vmem:[%s3546_s24 + $0xb0] sm:$0xff] }
 0x1e1   : > { %v1035_v21 = vpop.f32.mrf.mxu1  ;;  %v3605_v15 = vpack.c.bf16 %v1677_v13, %v1676_v12 }
 0x1e2   : > { %v1108_v22 = vpack.c.bf16 %v1087_v18, %v1086_v17  ;;  %v1036_v24 = vadd.f32 %v3506_v61, %v1035_v21  ;;  %v1092_v14 = vmax.f32 %v1044_v20, 0.0  ;;  %v1679_v17 = vld [vmem:[%s3546_s24 + $0xa8] sm:$0xff]  ;;  %v1681_v20 = vld [vmem:[%s3546_s24 + $0xb8] sm:$0xff] }
 0x1e3   : > { %v2839_v5 = vpop.f32.mrf.mxu1  ;;  %v3613_v18 = vpack.c.bf16 %v1679_v17, %v1678_v16  ;;  %v3617_v21 = vpack.c.bf16 %v1681_v20, %v1680_v19 }
 0x1e4   : > { %v1047_v26 = vadd.f32 %v2839_v5, %v3506_v61  ;;  %2880 = vmatprep.mubr.bf16.mxu0 %v1108_v22  ;;  %v1090_v28 = vmax.f32 %v1036_v24, 0.0  ;;  %v1682_v22 = vld [vmem:[%s3546_s24 + $0xc0] sm:$0xff]  ;;  %v1683_v24 = vld [vmem:[%s3546_s24 + $0xc8] sm:$0xff]  ;;  %v1684_v5 = vld [vmem:[%s3546_s24 + $0xd0] sm:$0xff] }
 0x1e5   : > { %v1038_v27 = vpop.f32.mrf.mxu1  ;;  %2881 = vmatmul.mubr.bf16.gmra.mxu0 %v1109_v25  ;;  %v3625_v25 = vpack.c.bf16 %v1683_v24, %v1682_v22 }
 0x1e6   : > { %v1093_v29 = vmax.f32 %v1047_v26, 0.0  ;;  %v1039_v30 = vadd.f32 %v3506_v61, %v1038_v27  ;;  %v1685_v26 = vld [vmem:[%s3546_s24 + $0xd8] sm:$0xff]  ;;  %v1686_v27 = vld [vmem:[%s3546_s24 + $0xe0] sm:$0xff] }
 0x1e7   : > { %v2842_v31 = vpop.f32.mrf.mxu1 }
 0x1e8   : > { %v1091_v33 = vmax.f32 %v1039_v30, 0.0  ;;  %v1111_v34 = vpack.c.bf16 %v1093_v29, %v1092_v14  ;;  %v1060_v23 = vadd.f32 %v2842_v31, %v3506_v61  ;;  %v3629_v14 = vpack.c.bf16 %v1685_v26, %v1684_v5  ;;  %v1688_v29 = vld [vmem:[%s3546_s24 + $0xf0] sm:$0xff]  ;;  %v1689_v31 = vld [vmem:[%s3546_s24 + $0xf8] sm:$0xff] }
 0x1e9   : > { %v1051_v32 = vpop.f32.mrf.mxu1 }
 0x1ea   : > { %v1110_v35 = vpack.c.bf16 %v1091_v33, %v1090_v28  ;;  %v1052_v36 = vadd.f32 %v3506_v61, %v1051_v32  ;;  %v1096_v39 = vmax.f32 %v1060_v23, 0.0  ;;  %v1687_v28 = vld [vmem:[%s3546_s24 + $0xe8] sm:$0xff]  ;;  %v1985_v33 = vld [vmem:[%s3885_s12] sm:$0x3]  ;;  %v3647_v23 = vpack.c.bf16 %v1689_v31, %v1688_v29  ;;  %v3128_v32 = vld [vmem:[%s3884_s11 + $0x30] sm:$0xff]  }
 0x1eb   : > { %v2843_v37 = vpop.f32.mrf.mxu1  ;;  %v3638_v30 = vpack.c.bf16 %v1687_v28, %v1686_v27  ;;  %v1987_v62 = vsel %vm1756_vm1, %v1985_v33, 0 }
 0x1ec   : > { %v1063_v38 = vadd.f32 %v2843_v37, %v3506_v61  ;;  %2884 = vmatprep.mubr.bf16.mxu0 %v1110_v35  ;;  %v1094_v42 = vmax.f32 %v1052_v36, 0.0  ;;  %v3129_v35 = vld [vmem:[%s3884_s11 + $0x28] sm:$0xff]   ;;  %v3130_v36 = vld [vmem:[%s3884_s11 + $0x20] sm:$0xff]   ;;  %v3131_v37 = vld [vmem:[%s3884_s11 + $0x18] sm:$0xff]  }
 0x1ed   : > { %v1054_v40 = vpop.f32.mrf.mxu1  ;;  %2885 = vmatmul.mubr.bf16.gmra.mxu0 %v1111_v34  ;;  %v3127_v34 = vld [vmem:[%s3884_s11 + $0x38] sm:$0xff]  }
 0x1ee   : > { %v1097_v43 = vmax.f32 %v1063_v38, 0.0  ;;  %v1055_v44 = vadd.f32 %v3506_v61, %v1054_v40  ;;  %v3126_v61 = vld [vmem:[%s3882_s9] sm:$0xff]   ;;  %3008 = vmatprep.subr.bf16.mxu0 %v3127_v34  ;;  %v3132_v38 = vld [vmem:[%s3884_s11 + $0x10] sm:$0xff]  }
 0x1ef   : > { %2906 = vmatprep.subr.bf16.mxu1 %v3126_v61 }
 0x1f0   : > { %v1095_v45 = vmax.f32 %v1055_v44, 0.0  ;;  %v1113_v46 = vpack.c.bf16 %v1097_v43, %v1096_v39  ;;  %2907 = vmatpush3.bf16.msra.mxu1 %v3126_v61  ;;  %v3133_v39 = vld [vmem:[%s3884_s11 + $0x8] sm:$0xff]   ;;  %v3675_v43 = vld [vmem:[%s3881_s8] ss:$0 sm:$0xff] }
 0x1f1   : > { %3061 = vmatprep.subr.msk.bf16.mxu1 %vm1756_vm1, %v1985_v33 }
 0x1f2   : > { %v1112_v41 = vpack.c.bf16 %v1095_v45, %v1094_v42 }
 0x1f4   : > { %2888 = vmatprep.mubr.bf16.mxu0 %v1112_v41 }
 0x1f5   : > { %2889 = vmatmul.mubr.bf16.gmra.mxu0 %v1113_v46 }
 0x1f6   : > { %2942 = vmatprep.mubr.msk.bf16.mxu0 %vm1707_vm2, %v3553_v49 }
 0x1fd   : > { %2943 = vmatmul.mubr.msk.bf16.vlgmr.msra.gmra.mxu0 %vm1707_vm2, %v3557_v51 }
 0x1fe   : > { %2946 = vmatprep.mubr.msk.bf16.mxu0 %vm1707_vm2, %v3565_v54  ;;  %3009 = vmatpush3.bf16.msra.mxu0 %v3127_v34 }
 0x1ff   : > { %3010 = vmatprep.subr.bf16.mxu0 %v3128_v32 }
 0x202   : > { %3011 = vmatpush3.bf16.msra.mxu0 %v3128_v32 }
 0x203   : > { %3012 = vmatprep.subr.bf16.mxu0 %v3129_v35 }
 0x205   : > { %2947 = vmatmul.mubr.msk.bf16.gmra.mxu0 %vm1707_vm2, %v3569_v57 }
 0x206   : > { %2950 = vmatprep.mubr.msk.bf16.mxu0 %vm1707_vm2, %v3577_v60  ;;  %3013 = vmatpush3.bf16.msra.mxu0 %v3129_v35 }
 0x207   : > { %3014 = vmatprep.subr.bf16.mxu0 %v3130_v36 }
 0x20a   : > { %3015 = vmatpush3.bf16.msra.mxu0 %v3130_v36 }
 0x20b   : > { %3016 = vmatprep.subr.bf16.mxu0 %v3131_v37 }
 0x20d   : > { %2951 = vmatmul.mubr.msk.bf16.gmra.mxu0 %vm1707_vm2, %v3581_v0 }
 0x20e   : > { %2954 = vmatprep.mubr.msk.bf16.mxu0 %vm1707_vm2, %v3589_v4  ;;  %3017 = vmatpush3.bf16.msra.mxu0 %v3131_v37 }
 0x20f   : > { %3018 = vmatprep.subr.bf16.mxu0 %v3132_v38 }
 0x212   : > { %3019 = vmatpush3.bf16.msra.mxu0 %v3132_v38 }
 0x213   : > { %3020 = vmatprep.subr.bf16.mxu0 %v3133_v39 }
 0x215   : > { %2955 = vmatmul.mubr.msk.bf16.gmra.mxu0 %vm1707_vm2, %v3593_v8 }
 0x216   : > { %2958 = vmatprep.mubr.msk.bf16.mxu0 %vm1707_vm2, %v3601_v11  ;;  %3021 = vmatpush3.bf16.msra.mxu0 %v3133_v39 }
 0x21d   : > { %2959 = vmatmul.mubr.msk.bf16.gmra.mxu0 %vm1707_vm2, %v3605_v15 }
 0x21e   : > { %2962 = vmatprep.mubr.msk.bf16.mxu0 %vm1707_vm2, %v3613_v18 }
 0x225   : > { %2963 = vmatmul.mubr.msk.bf16.gmra.mxu0 %vm1707_vm2, %v3617_v21 }
 0x226   : > { %2966 = vmatprep.mubr.msk.bf16.mxu0 %vm1707_vm2, %v3625_v25 }
 0x22d   : > { %2967 = vmatmul.mubr.msk.bf16.gmra.mxu0 %vm1707_vm2, %v3629_v14 }
 0x22e   : > { %2970 = vmatprep.mubr.msk.bf16.mxu0 %vm1707_vm2, %v3638_v30 }
 0x235   : > { %2971 = vmatmul.mubr.msk.bf16.gmra.mxu0 %vm1707_vm2, %v3647_v23 }
 0x27d   : > { %v2862_v40 = vpop.f32.mrf.mxu0 }
 0x27e   : > { %v1228_v41 = vadd.f32 %v2862_v40, %v3675_v43 }
 0x27f   : > { %v1219_v42 = vpop.f32.mrf.mxu0 }
 0x280   : > { %v1220_v45 = vadd.f32 %v3675_v43, %v1219_v42  ;;  %v1348_v53 = vmax.f32 %v1228_v41, 0.0 }
 0x281   : > { %v2863_v44 = vpop.f32.mrf.mxu0 }
 0x282   : > { %v1231_v46 = vadd.f32 %v2863_v44, %v3675_v43  ;;  %v1346_v1 = vmax.f32 %v1220_v45, 0.0 }
 0x283   : > { %v1222_v61 = vpop.f32.mrf.mxu0 }
 0x284   : > { %v1223_v47 = vadd.f32 %v3675_v43, %v1222_v61  ;;  %v1349_v48 = vmax.f32 %v1231_v46, 0.0 }
 0x285   : > { %v2866_v50 = vpop.f32.mrf.mxu0 }
 0x286   : > { %v1347_v52 = vmax.f32 %v1223_v47, 0.0  ;;  %v1379_v58 = vpack.c.bf16 %v1349_v48, %v1348_v53  ;;  %v1244_v3 = vadd.f32 %v2866_v50, %v3675_v43 }
 0x287   : > { %v1235_v55 = vpop.f32.mrf.mxu0 }
 0x288   : > { %v1378_v56 = vpack.c.bf16 %v1347_v52, %v1346_v1  ;;  %v1236_v63 = vadd.f32 %v3675_v43, %v1235_v55  ;;  %v1352_v16 = vmax.f32 %v1244_v3, 0.0 }
 0x289   : > { %v2867_v59 = vpop.f32.mrf.mxu0 }
 0x28a   : > { %v1247_v2 = vadd.f32 %v2867_v59, %v3675_v43  ;;  %2908 = vmatprep.mubr.bf16.mxu1 %v1378_v56  ;;  %v1350_v12 = vmax.f32 %v1236_v63, 0.0 }
 0x28b   : > { %v1238_v6 = vpop.f32.mrf.mxu0  ;;  %2909 = vmatmul.mubr.bf16.vlgmr.msra.gmra.mxu1 %v1379_v58 }
 0x28c   : > { %v1239_v7 = vadd.f32 %v3675_v43, %v1238_v6  ;;  %2975 = vmatpush3.bf16.msra.mxu1 %v1987_v62  ;;  %v1353_v9 = vmax.f32 %v1247_v2, 0.0 }
 0x28d   : > { %v2870_v10 = vpop.f32.mrf.mxu0 }
 0x28e   : > { %v1351_v13 = vmax.f32 %v1239_v7, 0.0  ;;  %v1381_v20 = vpack.c.bf16 %v1353_v9, %v1352_v16  ;;  %v1260_v26 = vadd.f32 %v2870_v10, %v3675_v43 }
 0x28f   : > { %v1251_v17 = vpop.f32.mrf.mxu0 }
 0x290   : > { %v1380_v19 = vpack.c.bf16 %v1351_v13, %v1350_v12  ;;  %v1252_v24 = vadd.f32 %v3675_v43, %v1251_v17  ;;  %v1356_v32 = vmax.f32 %v1260_v26, 0.0 }
 0x291   : > { %v2871_v22 = vpop.f32.mrf.mxu0 }
 0x292   : > { %v1263_v5 = vadd.f32 %v2871_v22, %v3675_v43  ;;  %2912 = vmatprep.mubr.bf16.mxu1 %v1380_v19  ;;  %v1354_v33 = vmax.f32 %v1252_v24, 0.0 }
 0x293   : > { %v1254_v27 = vpop.f32.mrf.mxu0  ;;  %2913 = vmatmul.mubr.bf16.gmra.mxu1 %v1381_v20 }
 0x294   : > { %v1255_v28 = vadd.f32 %v3675_v43, %v1254_v27  ;;  %v1357_v29 = vmax.f32 %v1263_v5, 0.0 }
 0x295   : > { %v2874_v31 = vpop.f32.mrf.mxu0 }
 0x296   : > { %v1355_v34 = vmax.f32 %v1255_v28, 0.0  ;;  %v1383_v37 = vpack.c.bf16 %v1357_v29, %v1356_v32  ;;  %v1276_v42 = vadd.f32 %v2874_v31, %v3675_v43 }
 0x297   : > { %v1267_v35 = vpop.f32.mrf.mxu0 }
 0x298   : > { %v1382_v36 = vpack.c.bf16 %v1355_v34, %v1354_v33  ;;  %v1268_v39 = vadd.f32 %v3675_v43, %v1267_v35  ;;  %v1360_v48 = vmax.f32 %v1276_v42, 0.0 }
 0x299   : > { %v2875_v38 = vpop.f32.mrf.mxu0 }
 0x29a   : > { %v1279_v40 = vadd.f32 %v2875_v38, %v3675_v43  ;;  %2916 = vmatprep.mubr.bf16.mxu1 %v1382_v36  ;;  %v1358_v61 = vmax.f32 %v1268_v39, 0.0 }
 0x29b   : > { %v1270_v44 = vpop.f32.mrf.mxu0  ;;  %2917 = vmatmul.mubr.bf16.gmra.mxu1 %v1383_v37 }
 0x29c   : > { %v1271_v45 = vadd.f32 %v3675_v43, %v1270_v44  ;;  %v1361_v46 = vmax.f32 %v1279_v40, 0.0 }
 0x29d   : > { %v2878_v41 = vpop.f32.mrf.mxu0 }
 0x29e   : > { %v1359_v47 = vmax.f32 %v1271_v45, 0.0  ;;  %v1385_v52 = vpack.c.bf16 %v1361_v46, %v1360_v48  ;;  %v1292_v58 = vadd.f32 %v2878_v41, %v3675_v43 }
 0x29f   : > { %v1283_v50 = vpop.f32.mrf.mxu0 }
 0x2a0   : > { %v1384_v1 = vpack.c.bf16 %v1359_v47, %v1358_v61  ;;  %v1284_v55 = vadd.f32 %v3675_v43, %v1283_v50  ;;  %v1364_v7 = vmax.f32 %v1292_v58, 0.0 }
 0x2a1   : > { %v2879_v53 = vpop.f32.mrf.mxu0 }
 0x2a2   : > { %v1295_v56 = vadd.f32 %v2879_v53, %v3675_v43  ;;  %2920 = vmatprep.mubr.bf16.mxu1 %v1384_v1  ;;  %v1362_v3 = vmax.f32 %v1284_v55, 0.0 }
 0x2a3   : > { %v1286_v59 = vpop.f32.mrf.mxu0  ;;  %2921 = vmatmul.mubr.bf16.gmra.mxu1 %v1385_v52 }
 0x2a4   : > { %v1287_v62 = vadd.f32 %v3675_v43, %v1286_v59  ;;  %v1365_v63 = vmax.f32 %v1295_v56, 0.0 }
 0x2a5   : > { %v2882_v2 = vpop.f32.mrf.mxu0 }
 0x2a6   : > { %v1363_v6 = vmax.f32 %v1287_v62, 0.0  ;;  %v1387_v12 = vpack.c.bf16 %v1365_v63, %v1364_v7  ;;  %v1308_v19 = vadd.f32 %v2882_v2, %v3675_v43  ;;  %v3762_v2 = vld [vmem:[%s3883_s10] ss:$0 sm:$0xff] }
 0x2a7   : > { %v1299_v9 = vpop.f32.mrf.mxu0 }
 0x2a8   : > { %v1386_v10 = vpack.c.bf16 %v1363_v6, %v1362_v3  ;;  %v1300_v16 = vadd.f32 %v3675_v43, %v1299_v9  ;;  %v1368_v28 = vmax.f32 %v1308_v19, 0.0 }
 0x2a9   : > { %v2883_v13 = vpop.f32.mrf.mxu0 }
 0x2aa   : > { %v1311_v17 = vadd.f32 %v2883_v13, %v3675_v43  ;;  %2924 = vmatprep.mubr.bf16.mxu1 %v1386_v10  ;;  %v1366_v26 = vmax.f32 %v1300_v16, 0.0 }
 0x2ab   : > { %v1302_v20 = vpop.f32.mrf.mxu0  ;;  %2925 = vmatmul.mubr.bf16.gmra.mxu1 %v1387_v12 }
 0x2ac   : > { %v1303_v22 = vadd.f32 %v3675_v43, %v1302_v20  ;;  %v1369_v24 = vmax.f32 %v1311_v17, 0.0 }
 0x2ad   : > { %v2886_v5 = vpop.f32.mrf.mxu0 }
 0x2ae   : > { %v1367_v27 = vmax.f32 %v1303_v22, 0.0  ;;  %v1389_v33 = vpack.c.bf16 %v1369_v24, %v1368_v28  ;;  %v1324_v36 = vadd.f32 %v2886_v5, %v3675_v43 }
 0x2af   : > { %v1315_v29 = vpop.f32.mrf.mxu0 }
 0x2b0   : > { %v1388_v31 = vpack.c.bf16 %v1367_v27, %v1366_v26  ;;  %v1316_v32 = vadd.f32 %v3675_v43, %v1315_v29  ;;  %v1372_v45 = vmax.f32 %v1324_v36, 0.0 }
 0x2b1   : > { %v2887_v34 = vpop.f32.mrf.mxu0 }
 0x2b2   : > { %v1327_v35 = vadd.f32 %v2887_v34, %v3675_v43  ;;  %2928 = vmatprep.mubr.bf16.mxu1 %v1388_v31  ;;  %v1370_v42 = vmax.f32 %v1316_v32, 0.0 }
 0x2b3   : > { %v1318_v37 = vpop.f32.mrf.mxu0  ;;  %2929 = vmatmul.mubr.bf16.gmra.mxu1 %v1389_v33 }
 0x2b4   : > { %v1319_v38 = vadd.f32 %v3675_v43, %v1318_v37  ;;  %v1373_v39 = vmax.f32 %v1327_v35, 0.0 }
 0x2b5   : > { %v2890_v40 = vpop.f32.mrf.mxu0 }
 0x2b6   : > { %v1371_v44 = vmax.f32 %v1319_v38, 0.0  ;;  %v1340_v46 = vadd.f32 %v2890_v40, %v3675_v43  ;;  %v1391_v48 = vpack.c.bf16 %v1373_v39, %v1372_v45 }
 0x2b7   : > { %v1331_v41 = vpop.f32.mrf.mxu0 }
 0x2b8   : > { %v1390_v61 = vpack.c.bf16 %v1371_v44, %v1370_v42  ;;  %v1332_v47 = vadd.f32 %v3675_v43, %v1331_v41  ;;  %v1376_v52 = vmax.f32 %v1340_v46, 0.0 }
 0x2b9   : > { %v2891_v50 = vpop.f32.mrf.mxu0 }
 0x2ba   : > { %v1343_v1 = vadd.f32 %v2891_v50, %v3675_v43  ;;  %2932 = vmatprep.mubr.bf16.mxu1 %v1390_v61  ;;  %v1374_v55 = vmax.f32 %v1332_v47, 0.0 }
 0x2bb   : > { %v1334_v53 = vpop.f32.mrf.mxu0  ;;  %2933 = vmatmul.mubr.bf16.gmra.mxu1 %v1391_v48 }
 0x2bc   : > { %v1377_v56 = vmax.f32 %v1343_v1, 0.0  ;;  %v1335_v58 = vadd.f32 %v3675_v43, %v1334_v53  ;;  %v3134_v43 = vld [vmem:[%s3884_s11] sm:$0xff]  }
 0x2bd   : > { %3022 = vmatprep.subr.bf16.mxu0 %v3134_v43 }
 0x2be   : > { %v1375_v59 = vmax.f32 %v1335_v58, 0.0  ;;  %v1393_v62 = vpack.c.bf16 %v1377_v56, %v1376_v52  ;;  %3023 = vmatpush3.bf16.msra.mxu0 %v3134_v43 }
 0x2c0   : > { %v1392_v63 = vpack.c.bf16 %v1375_v59, %v1374_v55 }
 0x2c2   : > { %2936 = vmatprep.mubr.bf16.mxu1 %v1392_v63 }
 0x2c3   : > { %2937 = vmatmul.mubr.bf16.gmra.mxu1 %v1393_v62 }
 0x2c4   : > { %2976 = vmatprep.mubr.msk.bf16.mxu1 %vm1707_vm2, %v3553_v49  ;;  %v2944_v49 = vpop.f32.mrf.mxu0 }
 0x2cb   : > { %2977 = vmatmul.mubr.msk.bf16.vlgmr.msra.gmra.mxu1 %vm1707_vm2, %v3557_v51  ;;  %v1794_v51 = vpop.f32.mrf.mxu0 }
 0x2cc   : > { %2980 = vmatprep.mubr.msk.bf16.mxu1 %vm1707_vm2, %v3565_v54 }
 0x2cd   : > { %v2945_v54 = vpop.f32.mrf.mxu0 }
 0x2d3   : > { %2981 = vmatmul.mubr.msk.bf16.gmra.mxu1 %vm1707_vm2, %v3569_v57  ;;  %v1797_v57 = vpop.f32.mrf.mxu0 }
 0x2d4   : > { %2984 = vmatprep.mubr.msk.bf16.mxu1 %vm1707_vm2, %v3577_v60 }
 0x2d5   : > { %v2948_v60 = vpop.f32.mrf.mxu0 }
 0x2db   : > { %2985 = vmatmul.mubr.msk.bf16.gmra.mxu1 %vm1707_vm2, %v3581_v0  ;;  %v1810_v0 = vpop.f32.mrf.mxu0 }
 0x2dc   : > { %2988 = vmatprep.mubr.msk.bf16.mxu1 %vm1707_vm2, %v3589_v4 }
 0x2dd   : > { %v2949_v4 = vpop.f32.mrf.mxu0 }
 0x2e3   : > { %2989 = vmatmul.mubr.msk.bf16.gmra.mxu1 %vm1707_vm2, %v3593_v8  ;;  %v1813_v8 = vpop.f32.mrf.mxu0 }
 0x2e4   : > { %2992 = vmatprep.mubr.msk.bf16.mxu1 %vm1707_vm2, %v3601_v11 }
 0x2e5   : > { %v3745_v11 = vpop.f32.mrf.mxu0 }
 0x2eb   : > { %2993 = vmatmul.mubr.msk.bf16.gmra.mxu1 %vm1707_vm2, %v3605_v15  ;;  %v3747_v15 = vpop.f32.mrf.mxu0 }
 0x2ec   : > { %2996 = vmatprep.mubr.msk.bf16.mxu1 %vm1707_vm2, %v3613_v18 }
 0x2ed   : > { %v3749_v18 = vpop.f32.mrf.mxu0 }
 0x2f3   : > { %2997 = vmatmul.mubr.msk.bf16.gmra.mxu1 %vm1707_vm2, %v3617_v21  ;;  %v3751_v21 = vpop.f32.mrf.mxu0 }
 0x2f4   : > { %3000 = vmatprep.mubr.msk.bf16.mxu1 %vm1707_vm2, %v3625_v25 }
 0x2f5   : > { %v3753_v25 = vpop.f32.mrf.mxu0 }
 0x2fb   : > { %3001 = vmatmul.mubr.msk.bf16.gmra.mxu1 %vm1707_vm2, %v3629_v14  ;;  %v3755_v14 = vpop.f32.mrf.mxu0 }
 0x2fc   : > { %3004 = vmatprep.mubr.msk.bf16.mxu1 %vm1707_vm2, %v3638_v30 }
 0x2fd   : > { %v3757_v30 = vpop.f32.mrf.mxu0 }
 0x2ff   : > { %v3764_v6 = vpop.f32.mrf.mxu0 }
 0x301   : > { %v3769_v16 = vpop.f32.mrf.mxu0 }
 0x303   : > { %3005 = vmatmul.mubr.msk.bf16.gmra.mxu1 %vm1707_vm2, %v3647_v23  ;;  %v3772_v28 = vpop.f32.mrf.mxu0 }
 0x305   : > { %v3777_v40 = vpop.f32.mrf.mxu0 }
 0x307   : > { %v3780_v50 = vpop.f32.mrf.mxu0 }
 0x309   : > { %v3784_v59 = vpop.f32.mrf.mxu0 }
 0x34b   : > { %v2910_v23 = vpop.f32.mrf.mxu1 }
 0x34c   : > { %v1508_v9 = vadd.f32 %v2910_v23, %v3762_v2 }
 0x34d   : > { %v1499_v3 = vpop.f32.mrf.mxu1 }
 0x34e   : > { %v1500_v7 = vadd.f32 %v3762_v2, %v1499_v3  ;;  %v1628_v22 = vmax.f32 %v1508_v9, 0.0 }
 0x34f   : > { %v2911_v10 = vpop.f32.mrf.mxu1 }
 0x350   : > { %v1511_v12 = vadd.f32 %v2911_v10, %v3762_v2  ;;  %v1626_v17 = vmax.f32 %v1500_v7, 0.0  ;;  %v1923_v34 = vmul.f32 %v2944_v49, %v1628_v22 }
 0x351   : > { %v1502_v13 = vpop.f32.mrf.mxu1 }
 0x352   : > { %v1629_v19 = vmax.f32 %v1511_v12, 0.0  ;;  %v1503_v20 = vadd.f32 %v3762_v2, %v1502_v13  ;;  %v1921_v29 = vmul.f32 %v1794_v51, %v1626_v17 }
 0x353   : > { %v2914_v24 = vpop.f32.mrf.mxu1 }
 0x354   : > { %v1627_v5 = vmax.f32 %v1503_v20, 0.0  ;;  %v1924_v26 = vmul.f32 %v2945_v54, %v1629_v19  ;;  %v1524_v32 = vadd.f32 %v2914_v24, %v3762_v2 }
 0x355   : > { %v1515_v27 = vpop.f32.mrf.mxu1 }
 0x356   : > { %v1922_v31 = vmul.f32 %v1797_v57, %v1627_v5  ;;  %v1516_v33 = vadd.f32 %v3762_v2, %v1515_v27  ;;  %v1954_v38 = vpack.c.bf16 %v1924_v26, %v1923_v34  ;;  %v1632_v46 = vmax.f32 %v1524_v32, 0.0 }
 0x357   : > { %v2915_v35 = vpop.f32.mrf.mxu1 }
 0x358   : > { %v1527_v36 = vadd.f32 %v2915_v35, %v3762_v2  ;;  %v1953_v37 = vpack.c.bf16 %v1922_v31, %v1921_v29  ;;  %v1630_v42 = vmax.f32 %v1516_v33, 0.0  ;;  %v1927_v55 = vmul.f32 %v2948_v60, %v1632_v46 }
 0x359   : > { %v1518_v39 = vpop.f32.mrf.mxu1 }
 0x35a   : > { %v1633_v44 = vmax.f32 %v1527_v36, 0.0  ;;  %v1519_v45 = vadd.f32 %v3762_v2, %v1518_v39  ;;  %3024 = vmatprep.mubr.bf16.mxu0 %v1953_v37  ;;  %v1925_v1 = vmul.f32 %v1810_v0, %v1630_v42 }
 0x35b   : > { %v2918_v41 = vpop.f32.mrf.mxu1  ;;  %3025 = vmatmul.mubr.bf16.vlgmr.msra.gmra.mxu0 %v1954_v38 }
 0x35c   : > { %v1631_v61 = vmax.f32 %v1519_v45, 0.0  ;;  %v1928_v47 = vmul.f32 %v2949_v4, %v1633_v44  ;;  %v1540_v56 = vadd.f32 %v2918_v41, %v3762_v2 }
 0x35d   : > { %v1531_v48 = vpop.f32.mrf.mxu1 }
 0x35e   : > { %v1926_v52 = vmul.f32 %v1813_v8, %v1631_v61  ;;  %v1532_v53 = vadd.f32 %v3762_v2, %v1531_v48  ;;  %v1956_v49 = vpack.c.bf16 %v1928_v47, %v1927_v55  ;;  %v1636_v0 = vmax.f32 %v1540_v56, 0.0  ;;  %v3788_v8 = vpop.f32.mrf.mxu0 }
 0x35f   : > { %v2919_v58 = vpop.f32.mrf.mxu1 }
 0x360   : > { %v1543_v62 = vadd.f32 %v2919_v58, %v3762_v2  ;;  %v1955_v63 = vpack.c.bf16 %v1926_v52, %v1925_v1  ;;  %v1634_v51 = vmax.f32 %v1532_v53, 0.0  ;;  %v1931_v12 = vmul.f32 %v3745_v11, %v1636_v0  ;;  %v2965_v19 = vpop.f32.mrf.mxu0 }
 0x361   : > { %v1534_v43 = vpop.f32.mrf.mxu1 }
 0x362   : > { %v1637_v54 = vmax.f32 %v1543_v62, 0.0  ;;  %v1535_v57 = vadd.f32 %v3762_v2, %v1534_v43  ;;  %3028 = vmatprep.mubr.bf16.mxu0 %v1955_v63  ;;  %v1929_v7 = vmul.f32 %v3747_v15, %v1634_v51  ;;  %v1877_v29 = vpop.f32.mrf.mxu0 }
 0x363   : > { %v2922_v4 = vpop.f32.mrf.mxu1  ;;  %3029 = vmatmul.mubr.bf16.gmra.mxu0 %v1956_v49 }
 0x364   : > { %v1635_v60 = vmax.f32 %v1535_v57, 0.0  ;;  %v1932_v23 = vmul.f32 %v3749_v18, %v1637_v54  ;;  %v1556_v13 = vadd.f32 %v2922_v4, %v3762_v2  ;;  %v3804_v39 = vpop.f32.mrf.mxu0 }
 0x365   : > { %v1547_v3 = vpop.f32.mrf.mxu1 }
 0x366   : > { %v1930_v9 = vmul.f32 %v3751_v21, %v1635_v60  ;;  %v1548_v10 = vadd.f32 %v3762_v2, %v1547_v3  ;;  %v1958_v5 = vpack.c.bf16 %v1932_v23, %v1931_v12  ;;  %v1640_v15 = vmax.f32 %v1556_v13, 0.0  ;;  %v1890_v47 = vpop.f32.mrf.mxu0 }
 0x367   : > { %v2923_v17 = vpop.f32.mrf.mxu1 }
 0x368   : > { %v1559_v20 = vadd.f32 %v2923_v17, %v3762_v2  ;;  %v1957_v22 = vpack.c.bf16 %v1930_v9, %v1929_v7  ;;  %v1638_v26 = vmax.f32 %v1548_v10, 0.0  ;;  %v1935_v36 = vmul.f32 %v3753_v25, %v1640_v15  ;;  %v2969_v63 = vpop.f32.mrf.mxu0 }
 0x369   : > { %v1550_v24 = vpop.f32.mrf.mxu1 }
 0x36a   : > { %v1641_v18 = vmax.f32 %v1559_v20, 0.0  ;;  %v1551_v27 = vadd.f32 %v3762_v2, %v1550_v24  ;;  %3032 = vmatprep.mubr.bf16.mxu0 %v1957_v22  ;;  %v1933_v34 = vmul.f32 %v3755_v14, %v1638_v26  ;;  %v1893_v4 = vpop.f32.mrf.mxu0 }
 0x36b   : > { %v2926_v21 = vpop.f32.mrf.mxu1  ;;  %3033 = vmatmul.mubr.bf16.gmra.mxu0 %v1958_v5 }
 0x36c   : > { %v1639_v31 = vmax.f32 %v1551_v27, 0.0  ;;  %v1936_v11 = vmul.f32 %v3757_v30, %v1641_v18  ;;  %v1572_v37 = vadd.f32 %v2926_v21, %v3762_v2  ;;  %v2972_v17 = vpop.f32.mrf.mxu0 }
 0x36d   : > { %v1563_v33 = vpop.f32.mrf.mxu1 }
 0x36e   : > { %v1934_v32 = vmul.f32 %v3764_v6, %v1639_v31  ;;  %v1564_v35 = vadd.f32 %v3762_v2, %v1563_v33  ;;  %v1960_v46 = vpack.c.bf16 %v1936_v11, %v1935_v36  ;;  %v1644_v6 = vmax.f32 %v1572_v37, 0.0  ;;  %v1906_v15 = vpop.f32.mrf.mxu0 }
 0x36f   : > { %v2927_v38 = vpop.f32.mrf.mxu1 }
 0x370   : > { %v1575_v42 = vadd.f32 %v2927_v38, %v3762_v2  ;;  %v1959_v44 = vpack.c.bf16 %v1934_v32, %v1933_v34  ;;  %v1642_v30 = vmax.f32 %v1564_v35, 0.0  ;;  %v1939_v56 = vmul.f32 %v3769_v16, %v1644_v6  ;;  %v2973_v36 = vpop.f32.mrf.mxu0 }
 0x371   : > { %v1566_v45 = vpop.f32.mrf.mxu1 }
 0x372   : > { %v1645_v41 = vmax.f32 %v1575_v42, 0.0  ;;  %v1567_v14 = vadd.f32 %v3762_v2, %v1566_v45  ;;  %3036 = vmatprep.mubr.bf16.mxu0 %v1959_v44  ;;  %v1937_v52 = vmul.f32 %v3772_v28, %v1642_v30 }
 0x373   : > { %v2930_v61 = vpop.f32.mrf.mxu1  ;;  %3037 = vmatmul.mubr.bf16.gmra.mxu0 %v1960_v46 }
 0x374   : > { %v1643_v25 = vmax.f32 %v1567_v14, 0.0  ;;  %v1940_v48 = vmul.f32 %v3777_v40, %v1645_v41  ;;  %v1588_v58 = vadd.f32 %v2930_v61, %v3762_v2  ;;  %v1909_v14 = vpop.f32.mrf.mxu0 }
 0x375   : > { %v1579_v1 = vpop.f32.mrf.mxu1 }
 0x376   : > { %v1938_v53 = vmul.f32 %v3780_v50, %v1643_v25  ;;  %v1580_v55 = vadd.f32 %v3762_v2, %v1579_v1  ;;  %v1962_v54 = vpack.c.bf16 %v1940_v48, %v1939_v56  ;;  %v1648_v28 = vmax.f32 %v1588_v58, 0.0 }
 0x377   : > { %v2931_v62 = vpop.f32.mrf.mxu1 }
 0x378   : > { %v1591_v43 = vadd.f32 %v2931_v62, %v3762_v2  ;;  %v1961_v49 = vpack.c.bf16 %v1938_v53, %v1937_v52  ;;  %v1646_v57 = vmax.f32 %v1580_v55, 0.0  ;;  %v1943_v10 = vmul.f32 %v3784_v59, %v1648_v28 }
 0x379   : > { %v1582_v51 = vpop.f32.mrf.mxu1 }
 0x37a   : > { %v1649_v40 = vmax.f32 %v1591_v43, 0.0  ;;  %v1583_v0 = vadd.f32 %v3762_v2, %v1582_v51  ;;  %3040 = vmatprep.mubr.bf16.mxu0 %v1961_v49  ;;  %v1941_v3 = vmul.f32 %v3788_v8, %v1646_v57 }
 0x37b   : > { %v2934_v50 = vpop.f32.mrf.mxu1  ;;  %3041 = vmatmul.mubr.bf16.gmra.mxu0 %v1962_v54 }
 0x37c   : > { %v1647_v60 = vmax.f32 %v1583_v0, 0.0  ;;  %v1944_v16 = vmul.f32 %v2965_v19, %v1649_v40  ;;  %v1604_v12 = vadd.f32 %v2934_v50, %v3762_v2 }
 0x37d   : > { %v1595_v23 = vpop.f32.mrf.mxu1 }
 0x37e   : > { %v1596_v7 = vadd.f32 %v3762_v2, %v1595_v23  ;;  %v1942_v9 = vmul.f32 %v1877_v29, %v1647_v60  ;;  %v1964_v24 = vpack.c.bf16 %v1944_v16, %v1943_v10  ;;  %v1652_v8 = vmax.f32 %v1604_v12, 0.0 }
 0x37f   : > { %v2935_v13 = vpop.f32.mrf.mxu1 }
 0x380   : > { %v1963_v20 = vpack.c.bf16 %v1942_v9, %v1941_v3  ;;  %v1607_v22 = vadd.f32 %v2935_v13, %v3762_v2  ;;  %v1650_v26 = vmax.f32 %v1596_v7, 0.0  ;;  %v1947_v32 = vmul.f32 %v3804_v39, %v1652_v8 }
 0x381   : > { %v1598_v5 = vpop.f32.mrf.mxu1 }
 0x382   : > { %v1653_v18 = vmax.f32 %v1607_v22, 0.0  ;;  %v1599_v19 = vadd.f32 %v3762_v2, %v1598_v5  ;;  %3044 = vmatprep.mubr.bf16.mxu0 %v1963_v20  ;;  %v1945_v11 = vmul.f32 %v1890_v47, %v1650_v26 }
 0x383   : > { %v2938_v27 = vpop.f32.mrf.mxu1  ;;  %3045 = vmatmul.mubr.bf16.gmra.mxu0 %v1964_v24 }
 0x384   : > { %v1651_v21 = vmax.f32 %v1599_v19, 0.0  ;;  %v1620_v59 = vadd.f32 %v2938_v27, %v3762_v2  ;;  %v1948_v29 = vmul.f32 %v2969_v63, %v1653_v18 }
 0x385   : > { %v1611_v31 = vpop.f32.mrf.mxu1 }
 0x386   : > { %v1612_v33 = vadd.f32 %v3762_v2, %v1611_v31  ;;  %v1946_v34 = vmul.f32 %v1893_v4, %v1651_v21  ;;  %v1656_v42 = vmax.f32 %v1620_v59, 0.0  ;;  %v1966_v44 = vpack.c.bf16 %v1948_v29, %v1947_v32 }
 0x387   : > { %v2939_v35 = vpop.f32.mrf.mxu1 }
 0x388   : > { %v1965_v37 = vpack.c.bf16 %v1946_v34, %v1945_v11  ;;  %v1623_v38 = vadd.f32 %v2939_v35, %v3762_v2  ;;  %v1654_v46 = vmax.f32 %v1612_v33, 0.0  ;;  %v1951_v61 = vmul.f32 %v2972_v17, %v1656_v42 }
 0x389   : > { %v1614_v45 = vpop.f32.mrf.mxu1 }
 0x38a   : > { %v1657_v30 = vmax.f32 %v1623_v38, 0.0  ;;  %v1615_v41 = vadd.f32 %v3762_v2, %v1614_v45  ;;  %3048 = vmatprep.mubr.bf16.mxu0 %v1965_v37  ;;  %v1949_v25 = vmul.f32 %v1906_v15, %v1654_v46 }
 0x38b   : > { %3049 = vmatmul.mubr.bf16.gmra.mxu0 %v1966_v44  ;;  %v2978_v52 = vpop.f32.mrf.mxu1 }
 0x38c   : > { %v1655_v6 = vmax.f32 %v1615_v41, 0.0  ;;  %v1952_v47 = vmul.f32 %v2973_v36, %v1657_v30 }
 0x38d   : > { %v2023_v53 = vpop.f32.mrf.mxu1 }
 0x38e   : > { %v1950_v39 = vmul.f32 %v1909_v14, %v1655_v6  ;;  %v1968_v1 = vpack.c.bf16 %v1952_v47, %v1951_v61 }
 0x38f   : > { %v2979_v55 = vpop.f32.mrf.mxu1 }
 0x390   : > { %v1967_v48 = vpack.c.bf16 %v1950_v39, %v1949_v25 }
 0x391   : > { %v2026_v56 = vpop.f32.mrf.mxu1 }
 0x392   : > { %3052 = vmatprep.mubr.bf16.mxu0 %v1967_v48 }
 0x393   : > { %3053 = vmatmul.mubr.bf16.gmra.mxu0 %v1968_v1  ;;  %v2982_v58 = vpop.f32.mrf.mxu1 }
 0x395   : > { %v2039_v62 = vpop.f32.mrf.mxu1 }
 0x397   : > { %v2983_v63 = vpop.f32.mrf.mxu1 }
 0x399   : > { %v2042_v2 = vpop.f32.mrf.mxu1 }
 0x39b   : > { %v2986_v43 = vpop.f32.mrf.mxu1 }
 0x39d   : > { %v2055_v49 = vpop.f32.mrf.mxu1 }
 0x39f   : > { %v2987_v57 = vpop.f32.mrf.mxu1 }
 0x3a1   : > { %v2058_v50 = vpop.f32.mrf.mxu1 }
 0x3a3   : > { %v3827_v23 = vpop.f32.mrf.mxu1 }
 0x3a5   : > { %v2071_v10 = vpop.f32.mrf.mxu1 }
 0x3a7   : > { %v3829_v20 = vpop.f32.mrf.mxu1 }
 0x3a9   : > { %v2074_v26 = vpop.f32.mrf.mxu1 }
 0x3ab   : > { %v2994_v8 = vpop.f32.mrf.mxu1 }
 0x3ad   : > { %v2087_v59 = vpop.f32.mrf.mxu1 }
 0x3af   : > { %v2995_v33 = vpop.f32.mrf.mxu1 }
 0x3b1   : > { %v2090_v37 = vpop.f32.mrf.mxu1 }
 0x3b3   : > { %v2998_v45 = vpop.f32.mrf.mxu1 }
 0x3b5   : > { %v2103_v14 = vpop.f32.mrf.mxu1 }
 0x3b7   : > { %v2999_v25 = vpop.f32.mrf.mxu1 }
 0x41b   : > { %v3026_v51 = vpop.f32.mrf.mxu0 }
 0x41c   : > { %v2241_v3 = vadd.f32 %v3026_v51, %v2978_v52  ;;  %v2106_v52 = vpop.f32.mrf.mxu1 }
 0x41d   : > { %v2232_v54 = vpop.f32.mrf.mxu0 }
 0x41e   : > { %v2233_v40 = vadd.f32 %v2232_v54, %v2023_v53 }
 0x41f   : > { %v3027_v0 = vpop.f32.mrf.mxu0 }
 0x420   : > { %2359 = vxpose.xlu0.b32.start [1/16] (narrow) %v2233_v40, 8  ;;  %v2244_v12 = vadd.f32 %v3027_v0, %v2979_v55 }
 0x421   : > { %v2235_v28 = vpop.f32.mrf.mxu0 }
 0x422   : > { %v2236_v4 = vadd.f32 %v2235_v28, %v2026_v56 }
 0x423   : > { %v3030_v60 = vpop.f32.mrf.mxu0 }
 0x424   : > { %2360 = vxpose.xlu0.b32.cont [2/16] (narrow) %v2236_v4, 8  ;;  %v2257_v15 = vadd.f32 %v3030_v60, %v2982_v58  ;;  %v3002_v58 = vpop.f32.mrf.mxu1 }
 0x425   : > { %v2248_v16 = vpop.f32.mrf.mxu0 }
 0x426   : > { %v2249_v22 = vadd.f32 %v2248_v16, %v2039_v62 }
 0x427   : > { %v3031_v7 = vpop.f32.mrf.mxu0 }
 0x428   : > { %2361 = vxpose.xlu0.b32.cont [3/16] (narrow) %v2241_v3, 8  ;;  %v2260_v31 = vadd.f32 %v3031_v7, %v2983_v63 }
 0x429   : > { %v2251_v9 = vpop.f32.mrf.mxu0 }
 0x42a   : > { %v2252_v18 = vadd.f32 %v2251_v9, %v2042_v2 }
 0x42b   : > { %v3034_v13 = vpop.f32.mrf.mxu0 }
 0x42c   : > { %2362 = vxpose.xlu0.b32.cont [4/16] (narrow) %v2244_v12, 8  ;;  %v2273_v30 = vadd.f32 %v3034_v13, %v2986_v43  ;;  %v2119_v43 = vpop.f32.mrf.mxu1 }
 0x42d   : > { %v2264_v17 = vpop.f32.mrf.mxu0 }
 0x42e   : > { %v2265_v32 = vadd.f32 %v2264_v17, %v2055_v49 }
 0x42f   : > { %v3035_v24 = vpop.f32.mrf.mxu0 }
 0x430   : > { %2363 = vxpose.xlu0.b32.cont [5/16] (narrow) %v2249_v22, 8  ;;  %v2276_v61 = vadd.f32 %v3035_v24, %v2987_v57  ;;  %v3003_v57 = vpop.f32.mrf.mxu1 }
 0x431   : > { %v2267_v5 = vpop.f32.mrf.mxu0 }
 0x432   : > { %v2268_v42 = vadd.f32 %v2267_v5, %v2058_v50  ;;  %v2122_v28 = vpop.f32.mrf.mxu1 }
 0x433   : > { %v3038_v19 = vpop.f32.mrf.mxu0 }
 0x434   : > { %2364 = vxpose.xlu0.b32.cont [6/16] (narrow) %v2252_v18, 8  ;;  %v2289_v63 = vadd.f32 %v3038_v19, %v3827_v23  ;;  %v3006_v60 = vpop.f32.mrf.mxu1 }
 0x435   : > { %v2280_v27 = vpop.f32.mrf.mxu0 }
 0x436   : > { %v2281_v48 = vadd.f32 %v2280_v27, %v2071_v10  ;;  %v2135_v3 = vpop.f32.mrf.mxu1 }
 0x437   : > { %v3039_v21 = vpop.f32.mrf.mxu0 }
 0x438   : > { %2365 = vxpose.xlu0.b32.cont [7/16] (narrow) %v2257_v15, 8  ;;  %v2292_v51 = vadd.f32 %v3039_v21, %v3829_v20  ;;  %v3007_v10 = vpop.f32.mrf.mxu1 }
 0x439   : > { %v2283_v29 = vpop.f32.mrf.mxu0 }
 0x43a   : > { %v2284_v55 = vadd.f32 %v2283_v29, %v2074_v26  ;;  %v2138_v17 = vpop.f32.mrf.mxu1 }
 0x43b   : > { %v3042_v11 = vpop.f32.mrf.mxu0 }
 0x43c   : > { %2366 = vxpose.xlu0.b32.cont [8/16] (narrow) %v2260_v31, 8  ;;  %v2305_v41 = vadd.f32 %v3042_v11, %v2994_v8 }
 0x43d   : > { %v2296_v34 = vpop.f32.mrf.mxu0 }
 0x43e   : > { %v2297_v35 = vadd.f32 %v2296_v34, %v2087_v59 }
 0x43f   : > { %v3043_v36 = vpop.f32.mrf.mxu0 }
 0x440   : > { %2391 = vxpose.xlu1.b32.start [1/16] (narrow) %v2297_v35, 8  ;;  %2367 = vxpose.xlu0.b32.cont [9/16] (narrow) %v2265_v32, 8  ;;  %v2308_v47 = vadd.f32 %v3043_v36, %v2995_v33 }
 0x441   : > { %v2299_v38 = vpop.f32.mrf.mxu0 }
 0x442   : > { %v2300_v44 = vadd.f32 %v2299_v38, %v2090_v37 }
 0x443   : > { %v3046_v46 = vpop.f32.mrf.mxu0 }
 0x444   : > { %2392 = vxpose.xlu1.b32.cont [2/16] (narrow) %v2300_v44, 8  ;;  %2368 = vxpose.xlu0.b32.cont [10/16] (narrow) %v2268_v42, 8  ;;  %v2321_v2 = vadd.f32 %v3046_v46, %v2998_v45 }
 0x445   : > { %v2312_v6 = vpop.f32.mrf.mxu0 }
 0x446   : > { %v2313_v1 = vadd.f32 %v2312_v6, %v2103_v14 }
 0x447   : > { %v3047_v39 = vpop.f32.mrf.mxu0 }
 0x448   : > { %2393 = vxpose.xlu1.b32.cont [3/16] (narrow) %v2305_v41, 8  ;;  %2369 = vxpose.xlu0.b32.cont [11/16] (narrow) %v2273_v30, 8  ;;  %v2324_v54 = vadd.f32 %v3047_v39, %v2999_v25 }
 0x449   : > { %v2315_v53 = vpop.f32.mrf.mxu0 }
 0x44a   : > { %v2316_v56 = vadd.f32 %v2315_v53, %v2106_v52 }
 0x44b   : > { %v3050_v62 = vpop.f32.mrf.mxu0 }
 0x44c   : > { %2394 = vxpose.xlu1.b32.cont [4/16] (narrow) %v2308_v47, 8  ;;  %2370 = vxpose.xlu0.b32.cont [12/16] (narrow) %v2276_v61, 8  ;;  %v2337_v23 = vadd.f32 %v3050_v62, %v3002_v58 }
 0x44d   : > { %v2328_v49 = vpop.f32.mrf.mxu0 }
 0x44e   : > { %v2329_v0 = vadd.f32 %v2328_v49, %v2119_v43 }
 0x44f   : > { %v3051_v40 = vpop.f32.mrf.mxu0 }
 0x450   : > { %2395 = vxpose.xlu1.b32.cont [5/16] (narrow) %v2313_v1, 8  ;;  %2371 = vxpose.xlu0.b32.cont [13/16] (narrow) %v2281_v48, 8  ;;  %v2340_v9 = vadd.f32 %v3051_v40, %v3003_v57 }
 0x451   : > { %v2331_v50 = vpop.f32.mrf.mxu0 }
 0x452   : > { %v2332_v4 = vadd.f32 %v2331_v50, %v2122_v28 }
 0x453   : > { %v3054_v16 = vpop.f32.mrf.mxu0 }
 0x454   : > { %2396 = vxpose.xlu1.b32.cont [6/16] (narrow) %v2316_v56, 8  ;;  %2372 = vxpose.xlu0.b32.cont [14/16] (narrow) %v2284_v55, 8  ;;  %v2353_v24 = vadd.f32 %v3054_v16, %v3006_v60 }
 0x455   : > { %v2344_v7 = vpop.f32.mrf.mxu0 }
 0x456   : > { %v2345_v13 = vadd.f32 %v2344_v7, %v2135_v3 }
 0x457   : > { %v3055_v12 = vpop.f32.mrf.mxu0 }
 0x458   : > { %2397 = vxpose.xlu1.b32.cont [7/16] (narrow) %v2321_v2, 8  ;;  %2373 = vxpose.xlu0.b32.cont [15/16] (narrow) %v2289_v63, 8  ;;  %v2356_v5 = vadd.f32 %v3055_v12, %v3007_v10 }
 0x459   : > { %v2347_v20 = vpop.f32.mrf.mxu0 }
 0x45a   : > { %v2348_v22 = vadd.f32 %v2347_v20, %v2138_v17 }
 0x45c   : > { %2398 = vxpose.xlu1.b32.cont [8/16] (narrow) %v2324_v54, 8  ;;  %2374 = vxpose.xlu0.b32.end [16/16] (narrow) %v2292_v51, 8 }
 0x460   : > { %2399 = vxpose.xlu1.b32.cont [9/16] (narrow) %v2329_v0, 8 }
 0x464   : > { %2400 = vxpose.xlu1.b32.cont [10/16] (narrow) %v2332_v4, 8 }
 0x468   : > { %2401 = vxpose.xlu1.b32.cont [11/16] (narrow) %v2337_v23, 8 }
 0x46c   : > { %2402 = vxpose.xlu1.b32.cont [12/16] (narrow) %v2340_v9, 8 }
 0x470   : > { %2403 = vxpose.xlu1.b32.cont [13/16] (narrow) %v2345_v13, 8 }
 0x474   : > { %2404 = vxpose.xlu1.b32.cont [14/16] (narrow) %v2348_v22, 8 }
 0x478   : > { %2405 = vxpose.xlu1.b32.cont [15/16] (narrow) %v2353_v24, 8 }
 0x47c   : > { %2406 = vxpose.xlu1.b32.end [16/16] (narrow) %v2356_v5, 8 }
 0x49c   : > { %v2375_v26 = vpop.trf.xlu0 }
 0x49d   : > { %2423 = vst [vmem:[%s474_s20] sm:$0xff] %v2375_v26 }
 0x4bc   : > { %v2407_v18 = vpop.trf.xlu1 }
 0x4bd   : > { %2424 = vst [vmem:[%s474_s20 + $0x8] sm:$0xff] %v2407_v18 }
 0x4be   : > { %3148 = shalt.err (!%p3145_p3)
}
 0x4bf   : > { %s3149_s24 = scalar_lea.hbm %s2438_s23, 256  ;;  %s3153_s3 = scalar_lea.hbm %s3886_s13, 512 }
 0x4c0   : > { %p3150_p4 = scmp.ne.s32.totalorder %s2438_s23, %s3149_s24  ;;  %p3154_p9 = scmp.lt.s32.totalorder %s2438_s23, %s3886_s13 }
 0x4c1   : > { %p3155_p10 = scmp.lt.s32.totalorder %s3153_s3, %s3149_s24 }
 0x4c2   : > { %p3151_p7 = pnand %p3150_p4, %p3306_p5 }
 0x4c3   : > { %p3156_p11 = por %p3155_p10, %p3154_p9 }
 0x4c4   : > { %p3152_p8 = pneg %p3151_p7 }
 0x4c6   : > { %p3157_p12 = pnand %p3156_p11, %p3152_p8 }
 0x4c8   : > { %3160 = shalt.err (!%p3157_p12)
}
 0x4c9   : > { %3062 = dma.vmem_to_hbm [thread:$0]  (%p3306_p5), %s3835_s21, 256, %s2438_s23, %s2426_s22  }
 0x4ca PF: > { %p3068_p13 = scmp.ge.s32.totalorder %s3195_s28, 2  ;;  %s2452_s1 = sand.u32 1, %s3183_s25  }
 0x4cb   : > { %s2453_s15 = scalar_lea.sflag [#allocation3], %s2452_s1 }
 0x4cc   : > { %p3065_p0 = pnand %p3068_p13, %p3310_p6 }
 0x4ce   : > { %p3066_p1 = pneg %p3065_p0 }
 0x4d0   : > { %3178 = dma.done.wait (%p3066_p1), %s2453_s15, 256  }
 0x4d1   : > { %3180 = vsyncadd (%p3066_p1), %s2453_s15, 4294967040  ;;  %p23_p2 = scmp.ge.s32.totalorder %s3293_s14, 4   ;;  %s3899_s25 = smov %s3187_s26 }
 0x4d2   : > { %s3900_s26 = smov %s3191_s27  ;;  %s3901_s27 = smov %s3304_s17 }
 0x4d3   : > { %s3902_s28 = smov %s3293_s14  ;;  %25 = sbr.rel (!%p23_p2) target bundleno = 8 (0x8), region = 110 }
 0x4d8   :  { %2458 = vsyncpa [#allocation3], 1 }
 0x4d9   :  { %2460 = vsyncpa [#allocation3 + $0x1], 1 }

</bundles_post_ra>
